<compile_context>
chip_gen: v5e
topology: v5e:2x2
jax: 0.10.0
libtpu: 0.0.40
codegen_flags: <defaults>
</compile_context>

<pallas_src>
import jax
import jax.numpy as jnp
from jax.experimental import pallas as pl
from jax.experimental.pallas import tpu as pltpu


# ----------------------------- Pallas kernel ------------------------------ #
def cbow_loss_kernel(emb_ref, vecs_ref, rep_ref, seg_ref, out_ref):
    eps = jnp.float32(1e-5)
    n_tot = seg_ref.shape[1]                      # 1 + n_negs
    inv_n = jnp.float32(1.0 / (n_tot - 1))

    # Replicate emb across the (1 + N) word slots on the MXU.  `rep` is an
    # exact 0/1 selector, so this bf16 single-pass matmul reproduces the bf16
    # embedding values exactly (f32 accumulate), keeping the big elementwise
    # multiply lane-dense.
    emb_rep = jnp.dot(emb_ref[...], rep_ref[...],
                      preferred_element_type=jnp.float32)            # (TB, (1+N)*E)

    # Elementwise products in f32 (matches the reference f32 math).
    prod = vecs_ref[...].astype(jnp.float32) * emb_rep               # (TB, (1+N)*E)

    # Signed segmented sum over each slot's E-slice on the MXU:
    #   scores[:, 0]    = +<target_vec, emb>
    #   scores[:, n>=1] = -<neg_vec_n, emb>
    scores = jnp.dot(prod, seg_ref[...],
                     preferred_element_type=jnp.float32,
                     precision=jax.lax.Precision.HIGHEST)            # (TB, 1+N)

    logp = jnp.log(jax.nn.sigmoid(scores) + eps)                     # (TB, 1+N)

    # loss = -( logp[:,0] + mean_{n>=1} logp[:,n] ): weight slot 0 by 1 and the
    # negatives by 1/N, then a single masked lane reduction.
    col = jax.lax.broadcasted_iota(jnp.int32, (1, n_tot), 1)
    w = jnp.where(col == 0, jnp.float32(1.0), inv_n)                 # (1, 1+N)
    out_ref[...] = -jnp.sum(logp * w, axis=-1, keepdims=True)        # (TB, 1)


def _batch_tile(batch, n_cols, emb_dim, in_itemsize,
                vmem_budget_bytes=6 * 1024 * 1024):
    """Pick a batch tile that keeps the double-buffered bf16 inputs plus the
    f32 in-kernel working set comfortably inside the scoped-VMEM default on
    v5e/v6e/v7x (v7x has only 64 MiB physical VMEM, so stay conservative)."""
    per_row = (2 * (n_cols + emb_dim) * in_itemsize   # 2x-buffered bf16 inputs
               + 3 * n_cols * 4                       # f32 temps (vecs, rep'd emb, prod)
               + 1024)                                # scores/logp/out slack
    tb = vmem_budget_bytes // max(per_row, 1)
    tb = max(128, min(2048, (tb // 128) * 128))
    return batch if batch <= tb else tb


def cbow_loss(embedding, vectors):
    """embedding: (B, E); vectors: (B, 1+N, E) with slot 0 = target word.
    Returns the per-example loss (B,) of CBOWNet.forward."""
    B, E = embedding.shape
    n_tot = vectors.shape[1]                # 1 + n_negs
    n_negs = n_tot - 1

    # Lane-dense flat layout (free row-major reshape).
    flat = vectors.reshape(B, n_tot * E)

    tb = _batch_tile(B, n_tot * E, E, jnp.dtype(embedding.dtype).itemsize)
    b_pad = pl.cdiv(B, tb) * tb
    if b_pad != B:
        pad = ((0, b_pad - B), (0, 0))
        embedding = jnp.pad(embedding, pad)
        flat = jnp.pad(flat, pad)

    # Constant selector matrices for the in-kernel MXU replicate / signed
    # segmented sum.  rep is exact in bf16 (0/1); seg carries the +/- sign of
    # each slot (+1 for the target, -1 for negatives, i.e. PyTorch's .neg()).
    # TODO(synk): for very large E (>=128) these grow as N*E^2; chunk N instead.
    rep = jnp.tile(jnp.eye(E, dtype=jnp.bfloat16), (1, n_tot))       # (E, (1+N)*E)
    signs = jnp.concatenate([jnp.ones((1,), jnp.float32),
                             -jnp.ones((n_negs,), jnp.float32)])
    seg = (jnp.repeat(jnp.eye(n_tot, dtype=jnp.float32), E, axis=0)
           * signs[None, :])                                          # ((1+N)*E, 1+N)

    out = pl.pallas_call(
        cbow_loss_kernel,
        out_shape=jax.ShapeDtypeStruct((b_pad, 1), jnp.float32),
        grid_spec=pltpu.PrefetchScalarGridSpec(
            num_scalar_prefetch=0,
            grid=(b_pad // tb,),
            in_specs=[
                pl.BlockSpec((tb, E), lambda i: (i, 0)),
                pl.BlockSpec((tb, n_tot * E), lambda i: (i, 0)),
                pl.BlockSpec((E, n_tot * E), lambda i: (0, 0)),    # resident const
                pl.BlockSpec((n_tot * E, n_tot), lambda i: (0, 0)),  # resident const
            ],
            out_specs=pl.BlockSpec((tb, 1), lambda i: (i, 0)),
        ),
        compiler_params=pltpu.CompilerParams(
            dimension_semantics=("parallel",),
        ),
    )(embedding, flat, rep, seg)
    return out[:B, 0]


# ------------------------------- JAX glue --------------------------------- #
class CBOWNetPallas:
    """Deterministic, self-contained re-implementation of CBOWNet.forward."""

    def __init__(self, key, input_vocab_size, output_vocab_size,
                 output_embedding_size, n_negs=20, weights=None):
        k1, k2 = jax.random.split(key)
        self.n_negs = n_negs
        self.output_vocab_size = output_vocab_size
        self.output_embedding_size = output_embedding_size

        # Tables stored in bf16: the kernel is HBM-bound on the gathered word
        # vectors, so halving bytes/element ~doubles end-to-end throughput
        # (upcast to f32 happens inside the kernel).
        # TODO(synk): the original encoder is an injected external nn.Module;
        # a mean-of-input-embeddings CBOW encoder is used as a deterministic stand-in.
        self.in_emb = (jax.random.normal(
            k1, (input_vocab_size + 1, output_embedding_size), jnp.float32) * 0.1
        ).at[0].set(0.0).astype(jnp.bfloat16)           # padding_idx=0
        self.out_emb = (jax.random.normal(
            k2, (output_vocab_size + 1, output_embedding_size), jnp.float32) * 0.1
        ).at[0].set(0.0).astype(jnp.bfloat16)           # padding_idx=0

        if weights is not None:
            wf = jnp.power(jnp.asarray(weights, jnp.float32), 0.75)
            self.weights = wf / wf.sum()
        else:
            self.weights = None

    def encode(self, input_s):
        # (B, C) int32 context ids -> (B, E) bf16 (mean computed in f32)
        return jnp.mean(self.in_emb[input_s].astype(jnp.float32),
                        axis=1).astype(jnp.bfloat16)

    def sample_negatives(self, batch_size, rng_key):
        # torch.multinomial / uniform_ equivalent
        if self.weights is not None:
            logits = jnp.log(self.weights + 1e-20)
            nwords = jax.random.categorical(
                rng_key, logits, shape=(batch_size, self.n_negs))
        else:
            nwords = jax.random.randint(
                rng_key, (batch_size, self.n_negs), 0, self.output_vocab_size)
        return nwords.astype(jnp.int32)

    def kernel_inputs(self, input_s, missing_word, rng_key):
        embedding = self.encode(input_s)                        # (B, E)        bf16
        nwords = self.sample_negatives(embedding.shape[0], rng_key)
        # Single fused gather: slot 0 = target word, slots 1..N = negatives.
        all_ids = jnp.concatenate(
            [missing_word[:, None].astype(jnp.int32), nwords], axis=1)
        vectors = self.out_emb[all_ids]                         # (B, 1+N, E)   bf16
        return embedding, vectors

    def forward(self, input_s, missing_word, rng_key):
        emb, vectors = self.kernel_inputs(input_s, missing_word, rng_key)
        return cbow_loss(emb, vectors)


# ------------------------------ reference --------------------------------- #
def reference_loss(embedding, vectors):
    eps = 1e-5
    embedding = embedding.astype(jnp.float32)
    vectors = vectors.astype(jnp.float32)
    mwv = vectors[:, 0, :]
    nvec = vectors[:, 1:, :]
    o = jnp.sum(mwv * embedding, axis=-1)
    oloss = jnp.log(jax.nn.sigmoid(o) + eps)
    n = jnp.sum((-nvec) * embedding[:, None, :], axis=-1)
    nloss = jnp.mean(jnp.log(jax.nn.sigmoid(n) + eps), axis=1)
    return -(oloss + nloss)


if __name__ == "__main__":
    key = jax.random.PRNGKey(0)
    k_params, k_ctx, k_tgt, k_neg, k_w = jax.random.split(key, 5)

    B = 8            # batch
    C = 6            # context window size
    E = 32           # output_embedding_size
    V_IN = 50        # input vocab size
    V_OUT = 100      # output_vocab_size
    N_NEGS = 20

    # deterministic word-frequency weights (triggers the multinomial branch)
    weights = jax.random.uniform(k_w, (V_OUT + 1,), minval=0.1, maxval=1.0)

    model = CBOWNetPallas(k_params, V_IN, V_OUT, E,
                          n_negs=N_NEGS, weights=weights)

    input_s = jax.random.randint(k_ctx, (B, C), 1, V_IN + 1, dtype=jnp.int32)
    missing_word = jax.random.randint(k_tgt, (B,), 1, V_OUT + 1, dtype=jnp.int32)

    loss = jax.block_until_ready(model.forward(input_s, missing_word, k_neg))

    # sanity check vs. pure-JAX reference (same bf16-quantized inputs).
    # Tolerance accounts for MXU pass structure vs. the pure-VPU reference.
    emb, vectors = model.kernel_inputs(input_s, missing_word, k_neg)
    ref = reference_loss(emb, vectors)
    assert loss.shape == (B,)
    assert bool(jnp.all(jnp.isfinite(loss)))
    assert jnp.allclose(loss, ref, atol=1e-3, rtol=1e-3)

    print("KERNEL_OK")
</pallas_src>

<mosaic_0001>
module attributes {stable_mosaic.version = 11 : i64} {
  func.func @cbow_loss_kernel(%arg0: i32, %arg1: memref<8x32xbf16, #tpu.memory_space<vmem>>, %arg2: memref<8x672xbf16, #tpu.memory_space<vmem>>, %arg3: memref<32x672xbf16, #tpu.memory_space<vmem>>, %arg4: memref<672x21xf32, #tpu.memory_space<vmem>>, %arg5: memref<8x1xf32, #tpu.memory_space<vmem>>) attributes {dimension_semantics = [#tpu.dimension_semantics<parallel>], iteration_bounds = array<i64: 1>, scalar_prefetch = 0 : i64, scratch_operands = 0 : i64, tpu.core_type = #tpu.core_type<tc>, window_params = [{transform_indices = @transform_0, window_bounds = array<i64: 8, 32>}, {transform_indices = @transform_1, window_bounds = array<i64: 8, 672>}, {pipeline_mode = #tpu.pipeline_mode<synchronous>, transform_indices = @transform_2, window_bounds = array<i64: 32, 672>}, {pipeline_mode = #tpu.pipeline_mode<synchronous>, transform_indices = @transform_3, window_bounds = array<i64: 672, 21>}, {transform_indices = @transform_4, window_bounds = array<i64: 8, 1>}]} {
    %c0 = arith.constant 0 : index
    %c0_0 = arith.constant 0 : index
    %0 = vector.load %arg1[%c0, %c0_0] : memref<8x32xbf16, #tpu.memory_space<vmem>>, vector<8x32xbf16>
    %c0_1 = arith.constant 0 : index
    %c0_2 = arith.constant 0 : index
    %1 = vector.load %arg3[%c0_1, %c0_2] : memref<32x672xbf16, #tpu.memory_space<vmem>>, vector<32x672xbf16>
    %cst = arith.constant dense<0.000000e+00> : vector<8x672xf32>
    %2 = tpu.matmul %0, %1, %cst {dimension_numbers = #tpu.dot_dimension_numbers<[1], [0], [0], [1], [0, 0, 1, 1], [], []>} : vector<8x32xbf16>, vector<32x672xbf16>, vector<8x672xf32> -> vector<8x672xf32>
    %c0_3 = arith.constant 0 : index
    %c0_4 = arith.constant 0 : index
    %3 = vector.load %arg2[%c0_3, %c0_4] : memref<8x672xbf16, #tpu.memory_space<vmem>>, vector<8x672xbf16>
    %4 = arith.extf %3 : vector<8x672xbf16> to vector<8x672xf32>
    %5 = arith.mulf %4, %2 : vector<8x672xf32>
    %c0_5 = arith.constant 0 : index
    %c0_6 = arith.constant 0 : index
    %6 = vector.load %arg4[%c0_5, %c0_6] : memref<672x21xf32, #tpu.memory_space<vmem>>, vector<672x21xf32>
    %cst_7 = arith.constant dense<0.000000e+00> : vector<8x21xf32>
    %7 = tpu.matmul %5, %6, %cst_7 {dimension_numbers = #tpu.dot_dimension_numbers<[1], [0], [0], [1], [0, 0, 1, 1], [], []>, precision = #tpu.contract_precision<fp32>} : vector<8x672xf32>, vector<672x21xf32>, vector<8x21xf32> -> vector<8x21xf32>
    %8 = arith.negf %7 : vector<8x21xf32>
    %9 = math.exp %8 : vector<8x21xf32>
    %cst_8 = arith.constant 1.000000e+00 : f32
    %10 = vector.broadcast %cst_8 : f32 to vector<8x21xf32>
    %11 = arith.addf %10, %9 : vector<8x21xf32>
    %12 = arith.divf %10, %11 : vector<8x21xf32>
    %cst_9 = arith.constant 9.99999974E-6 : f32
    %13 = vector.broadcast %cst_9 : f32 to vector<8x21xf32>
    %14 = arith.addf %12, %13 : vector<8x21xf32>
    %15 = math.log %14 : vector<8x21xf32>
    %16 = tpu.iota {dimensions = array<i32: 1>} : vector<1x21xi32>
    %c0_i32 = arith.constant 0 : i32
    %17 = vector.broadcast %c0_i32 : i32 to vector<1x21xi32>
    %18 = arith.cmpi eq, %16, %17 : vector<1x21xi32>
    %cst_10 = arith.constant 1.000000e+00 : f32
    %cst_11 = arith.constant 5.000000e-02 : f32
    %19 = vector.broadcast %cst_10 : f32 to vector<1x21xf32>
    %20 = vector.broadcast %cst_11 : f32 to vector<1x21xf32>
    %21 = arith.select %18, %19, %20 : vector<1x21xi1>, vector<1x21xf32>
    %22 = vector.broadcast %21 : vector<1x21xf32> to vector<8x21xf32>
    %23 = arith.mulf %15, %22 : vector<8x21xf32>
    %cst_12 = arith.constant dense<0.000000e+00> : vector<8xf32>
    %24 = vector.multi_reduction <add>, %23, %cst_12 [1] : vector<8x21xf32> to vector<8xf32>
    %25 = vector.shape_cast %24 : vector<8xf32> to vector<8x1xf32>
    %cst_13 = arith.constant 0.000000e+00 : f32
    %26 = vector.broadcast %cst_13 : f32 to vector<8x1xf32>
    %27 = arith.subf %26, %25 : vector<8x1xf32>
    %c0_14 = arith.constant 0 : index
    %c0_15 = arith.constant 0 : index
    %28 = vector.load %arg5[%c0_14, %c0_15] : memref<8x1xf32, #tpu.memory_space<vmem>>, vector<8x1xf32>
    tpu.vector_store %arg5[%c0_14, %c0_15], %27 {strides = array<i32>} : memref<8x1xf32, #tpu.memory_space<vmem>>, vector<8x1xf32>,
    return
  }
  func.func @transform_0(%arg0: i32) -> (i32, i32) {
    %c0_i32 = arith.constant 0 : i32
    %c0_i32_0 = arith.constant 0 : i32
    return %arg0, %c0_i32 : i32, i32
  }
  func.func @transform_1(%arg0: i32) -> (i32, i32) {
    %c0_i32 = arith.constant 0 : i32
    %c0_i32_0 = arith.constant 0 : i32
    return %arg0, %c0_i32 : i32, i32
  }
  func.func @transform_2(%arg0: i32) -> (i32, i32) {
    %c0_i32 = arith.constant 0 : i32
    %c0_i32_0 = arith.constant 0 : i32
    %c0_i32_1 = arith.constant 0 : i32
    return %c0_i32, %c0_i32_0 : i32, i32
  }
  func.func @transform_3(%arg0: i32) -> (i32, i32) {
    %c0_i32 = arith.constant 0 : i32
    %c0_i32_0 = arith.constant 0 : i32
    %c0_i32_1 = arith.constant 0 : i32
    return %c0_i32, %c0_i32_0 : i32, i32
  }
  func.func @transform_4(%arg0: i32) -> (i32, i32) {
    %c0_i32 = arith.constant 0 : i32
    %c0_i32_0 = arith.constant 0 : i32
    return %arg0, %c0_i32 : i32, i32
  }
}

</mosaic_0001>

<bundles_post_ra>
// kernel: tpu_custom_call.1
= control target key start
LH: loop header
LB: loop body
LE: loop exit
PB: predicated region body
PF: predicated region fallthrough
CT: control target
= control target key end

     0   :  { %vm91_vm0 = vcmask 261120   ;;  %vm2192_vm6 = vcmask 171008   ;;  %vm2197_vm7 = vcmask 7168   ;;  %s3995_s2 = inlined_call_operand.vmem [shape: bf16[32,672], index: 2, kind: input, shape index: {}]   ;;  %s3996_s0 = inlined_call_operand.vmem [shape: bf16[8,32], index: 0, kind: input, shape index: {}]   ;;  %s3997_s3 = inlined_call_operand.vmem [shape: f32[672,21], index: 3, kind: input, shape index: {}]   ;;  %s3998_s1 = inlined_call_operand.vmem [shape: bf16[8,672], index: 1, kind: input, shape index: {}]   ;;  %s3999_s4 = inlined_call_operand.vmem [shape: f32[8,1], index: 4, kind: output, shape index: {}]  }
   0x1   :  { %v2229_v0 = vld [vmem:[%s3995_s2 + $0x30] sm:$0xf]  ;;  %v2267_v1 = vld [vmem:[%s3995_s2 + $0x44] sm:$0xf0]  ;;  %v2205_v2 = vld [vmem:[%s3995_s2] sm:$0xf] }
   0x2   :  { %v2230_v3 = vor.u32 %v2267_v1, %v2229_v0  ;;  %v2261_v4 = vld [vmem:[%s3995_s2 + $0x14] sm:$0xf0]  ;;  %v2264_v5 = vld [vmem:[%s3995_s2 + $0x34] sm:$0xf]  ;;  %v2231_v6 = vld [vmem:[%s3995_s2 + $0x48] sm:$0xf0] }
   0x3   :  { %v2258_v7 = vld [vmem:[%s3995_s2 + $0x4] sm:$0xf]  ;;  %v2207_v8 = vld [vmem:[%s3995_s2 + $0x18] sm:$0xf0]  ;;  %v2206_v9 = vor.u32 %v2261_v4, %v2205_v2  ;;  %v2234_v10 = vor.u32 %v2264_v5, %v2231_v6  ;;  %v2237_v11 = vld [vmem:[%s3995_s2 + $0x38] sm:$0xf] }
   0x4   :  { %101 = vmatpush.bf16.msra.mxu0 %v2230_v3  ;;  %v2268_v12 = vld [vmem:[%s3995_s2 + $0x4c] sm:$0xf0]  ;;  %v2213_v13 = vld [vmem:[%s3995_s2 + $0x8] sm:$0xf]  ;;  %v2262_v15 = vld [vmem:[%s3995_s2 + $0x1c] sm:$0xf0]  ;;  %v2210_v19 = vor.u32 %v2258_v7, %v2207_v8 }
   0x5   :  { %v2238_v14 = vor.u32 %v2268_v12, %v2237_v11  ;;  %v2265_v16 = vld [vmem:[%s3995_s2 + $0x3c] sm:$0xf]  ;;  %v2239_v17 = vld [vmem:[%s3995_s2 + $0x50] sm:$0xf0]  ;;  %v2348_v18 = vld [vmem:[%s3996_s0] sm:$0xf]  ;;  %114 = vmatpush.bf16.msra.mxu1 %v2234_v10  ;;  %v2214_v24 = vor.u32 %v2262_v15, %v2213_v13 }
   0x6   :  { %v2242_v20 = vor.u32 %v2265_v16, %v2239_v17  ;;  %v2245_v21 = vld [vmem:[%s3995_s2 + $0x40] sm:$0xf]  ;;  %v2269_v22 = vld [vmem:[%s3995_s2 + $0x54] sm:$0xf0]  ;;  %v2259_v23 = vld [vmem:[%s3995_s2 + $0xc] sm:$0xf] }
   0x7   :  { %127 = vmatpush.bf16.msra.mxu2 %v2238_v14  ;;  %v2246_v25 = vor.u32 %v2269_v22, %v2245_v21  ;;  %v2215_v26 = vld [vmem:[%s3995_s2 + $0x20] sm:$0xf0]  ;;  %v2247_v28 = vld [vmem:[%s3995_s2 + $0x58] sm:$0xf0]  ;;  %v2221_v32 = vld [vmem:[%s3995_s2 + $0x10] sm:$0xf] }
   0x8   :  { %v2266_v27 = vld [vmem:[%s3995_s2 + $0x44] sm:$0xf]  ;;  %102 = vmatpush.bf16.msra.mxu0 %v2206_v9  ;;  %140 = vmatpush.bf16.msra.mxu3 %v2242_v20  ;;  %v2218_v29 = vor.u32 %v2259_v23, %v2215_v26  ;;  %v203_v31 = vld [vmem:[%s3997_s3 + $0x78] sm:$0xff]  ;;  %v2263_v33 = vld [vmem:[%s3995_s2 + $0x24] sm:$0xf0] }
   0x9   :  { %v2250_v30 = vor.u32 %v2266_v27, %v2247_v28  ;;  %v2377_v34 = vand.u32 4294901760, %v203_v31  ;;  %v2222_v35 = vor.u32 %v2263_v33, %v2221_v32  ;;  %v202_v36 = vld [vmem:[%s3997_s3 + $0x70] sm:$0xff]  ;;  %v2223_v38 = vld [vmem:[%s3995_s2 + $0x28] sm:$0xf0]  ;;  %115 = vmatpush.bf16.msra.mxu1 %v2210_v19  ;;  %v200_v42 = vld [vmem:[%s3997_s3 + $0x60] sm:$0xff] }
   0xa   :  { %v2260_v37 = vld [vmem:[%s3995_s2 + $0x14] sm:$0xf]  ;;  %v2388_v39 = vand.u32 4294901760, %v202_v36  ;;  %v201_v41 = vld [vmem:[%s3997_s3 + $0x68] sm:$0xff]  ;;  %v199_v43 = vld [vmem:[%s3997_s3 + $0x58] sm:$0xff]  ;;  %v2406_v46 = vand.u32 4294901760, %v200_v42 }
   0xb   :  { %v2226_v40 = vor.u32 %v2260_v37, %v2223_v38  ;;  %2251 = vmatmul.msk.bf16.vlgmr.msra.gmra.mxu0 %vm91_vm0, %v2348_v18  ;;  %128 = vmatpush.bf16.msra.mxu2 %v2214_v24  ;;  %v2402_v44 = vsub.f32 %v203_v31, %v2377_v34  ;;  %v2404_v45 = vand.u32 4294901760, %v201_v41  ;;  %v2408_v47 = vand.u32 4294901760, %v199_v43  ;;  %v198_v48 = vld [vmem:[%s3997_s3 + $0x50] sm:$0xff]  ;;  %v197_v49 = vld [vmem:[%s3997_s3 + $0x48] sm:$0xff]  ;;  %v196_v50 = vld [vmem:[%s3997_s3 + $0x40] sm:$0xff] }
   0xc   :  { %153 = vmatpush.bf16.msrb.mxu0 %v2246_v25  ;;  %141 = vmatpush.bf16.msra.mxu3 %v2218_v29  ;;  %v2420_v51 = vsub.f32 %v202_v36, %v2388_v39  ;;  %v2422_v52 = vand.u32 4294901760, %v198_v48  ;;  %v2424_v53 = vand.u32 4294901760, %v197_v49  ;;  %v2426_v54 = vand.u32 4294901760, %v196_v50  ;;  %v195_v5 = vld [vmem:[%s3997_s3 + $0x38] sm:$0xff]  ;;  %v194_v9 = vld [vmem:[%s3997_s3 + $0x30] sm:$0xff]  ;;  %v193_v12 = vld [vmem:[%s3997_s3 + $0x28] sm:$0xff] }
   0xd   :  { %166 = vmatpush.bf16.msrb.mxu1 %v2250_v30  ;;  %v4018_v55 = vand.u32 4294901760, %v2402_v44  ;;  %v2432_v56 = vsub.f32 %v201_v41, %v2404_v45  ;;  %v2435_v57 = vsub.f32 %v200_v42, %v2406_v46  ;;  %v2438_v58 = vsub.f32 %v199_v43, %v2408_v47  ;;  %v192_v13 = vld [vmem:[%s3997_s3 + $0x20] sm:$0xff]  ;;  %v191_v21 = vld [vmem:[%s3997_s3 + $0x18] sm:$0xff]  ;;  %v190_v28 = vld [vmem:[%s3997_s3 + $0x10] sm:$0xff] }
   0xe   :  { %2252 = vmatmul.msk.bf16.vlgmr.msra.gmra.mxu1 %vm91_vm0, %v2348_v18  ;;  %2253 = vmatmul.msk.bf16.vlgmr.msra.gmra.mxu2 %vm91_vm0, %v2348_v18  ;;  %v4016_v59 = vand.u32 4294901760, %v2420_v51  ;;  %v2445_v60 = vsub.f32 %v198_v48, %v2422_v52  ;;  %v2448_v61 = vsub.f32 %v197_v49, %v2424_v53  ;;  %v2465_v4 = vsub.f32 %v196_v50, %v2426_v54  ;;  %v188_v42 = vld [vmem:[%s3997_s3] sm:$0xff] }
   0xf   :  { %v319_v62 = vsub.f32 %v2402_v44, %v4018_v55  ;;  %v4014_v63 = vand.u32 4294901760, %v2432_v56  ;;  %v4013_v0 = vand.u32 4294901760, %v2435_v57  ;;  %276 = vmatpush.msrb.mxu2 %v2377_v34  ;;  %v4012_v1 = vand.u32 4294901760, %v2438_v58  ;;  %2254 = vmatmul.msk.bf16.vlgmr.msra.gmra.mxu3 %vm91_vm0, %v2348_v18 }
  0x10   :  { %154 = vmatpush.bf16.msrb.mxu0 %v2222_v35  ;;  %v325_v2 = vsub.f32 %v2420_v51, %v4016_v59  ;;  %v4010_v3 = vand.u32 4294901760, %v2445_v60  ;;  %v4008_v11 = vand.u32 4294901760, %v2448_v61  ;;  %v2493_v16 = vand.u32 4294901760, %v195_v5  ;;  %v189_v35 = vld [vmem:[%s3997_s3 + $0x8] sm:$0xff] }
  0x11   :  { %167 = vmatpush.bf16.msrb.mxu1 %v2226_v40  ;;  %v320_v6 = vand.u32 4294901760, %v319_v62  ;;  %v331_v7 = vsub.f32 %v2432_v56, %v4014_v63  ;;  %v337_v8 = vsub.f32 %v2435_v57, %v4013_v0  ;;  %278 = vmatpush.msrb.mxu2 %v2388_v39  ;;  %v343_v15 = vsub.f32 %v2438_v58, %v4012_v1  ;;  %v219_v62 = vld [vmem:[%s3997_s3 + $0xf8] sm:$0xff]  ;;  %v210_v0 = vld [vmem:[%s3997_s3 + $0xb0] sm:$0xff] }
  0x12   :  { %v326_v10 = vand.u32 4294901760, %v325_v2  ;;  %v349_v17 = vsub.f32 %v2445_v60, %v4010_v3  ;;  %v4007_v19 = vand.u32 4294901760, %v2465_v4  ;;  %v2501_v20 = vand.u32 4294901760, %v194_v9  ;;  %v211_v3 = vld [vmem:[%s3997_s3 + $0xb8] sm:$0xff] }
  0x13   :  { %321 = vmatpush.msrb.mxu3 %v320_v6  ;;  %v332_v14 = vand.u32 4294901760, %v331_v7  ;;  %280 = vmatpush.msrb.mxu2 %v2404_v45  ;;  %v338_v22 = vand.u32 4294901760, %v337_v8  ;;  %v2508_v23 = vsub.f32 %v195_v5, %v2493_v16  ;;  %v2510_v24 = vand.u32 4294901760, %v193_v12 }
  0x14   :  { %419 = vmatpush.msra.mxu0 %v2402_v44  ;;  %v2512_v25 = vand.u32 4294901760, %v192_v13  ;;  %v355_v26 = vsub.f32 %v2448_v61, %v4008_v11  ;;  %v2520_v27 = vsub.f32 %v194_v9, %v2501_v20  ;;  %v344_v29 = vand.u32 4294901760, %v343_v15  ;;  %v218_v9 = vld [vmem:[%s3997_s3 + $0xf0] sm:$0xff]  ;;  %v212_v11 = vld [vmem:[%s3997_s3 + $0xc0] sm:$0xff] }
  0x15   :  { %472 = vmatpush.msra.mxu1 %v2377_v34  ;;  %327 = vmatpush.msrb.mxu3 %v326_v10  ;;  %v4005_v30 = vand.u32 4294901760, %v2508_v23  ;;  %v2528_v31 = vsub.f32 %v193_v12, %v2510_v24  ;;  %v2530_v32 = vand.u32 4294901760, %v191_v21  ;;  %v361_v33 = vsub.f32 %v2465_v4, %v4007_v19 }
  0x16   :  { %422 = vmatpush.msra.mxu0 %v2420_v51  ;;  %282 = vmatpush.msrb.mxu2 %v2406_v46  ;;  %v350_v36 = vand.u32 4294901760, %v349_v17  ;;  %v4003_v37 = vand.u32 4294901760, %v2520_v27  ;;  %v2543_v38 = vsub.f32 %v192_v13, %v2512_v25  ;;  %v2545_v40 = vand.u32 4294901760, %v190_v28  ;;  %v217_v17 = vld [vmem:[%s3997_s3 + $0xe8] sm:$0xff] }
  0x17   :  { %474 = vmatpush.msra.mxu1 %v2388_v39  ;;  %333 = vmatpush.msrb.mxu3 %v332_v14  ;;  %v356_v41 = vand.u32 4294901760, %v355_v26  ;;  %v367_v43 = vsub.f32 %v2508_v23, %v4005_v30  ;;  %v4002_v48 = vand.u32 4294901760, %v2528_v31  ;;  %v2558_v49 = vsub.f32 %v191_v21, %v2530_v32  ;;  %v213_v30 = vld [vmem:[%s3997_s3 + $0xc8] sm:$0xff] }
  0x18   :  { %425 = vmatpush.msra.mxu0 %v2432_v56  ;;  %284 = vmatpush.msrb.mxu2 %v2408_v47  ;;  %v2560_v50 = vand.u32 4294901760, %v189_v35  ;;  %v362_v2 = vand.u32 4294901760, %v361_v33  ;;  %v373_v5 = vsub.f32 %v2520_v27, %v4003_v37  ;;  %v4001_v6 = vand.u32 4294901760, %v2543_v38  ;;  %v216_v33 = vld [vmem:[%s3997_s3 + $0xe0] sm:$0xff] }
  0x19   :  { %476 = vmatpush.msra.mxu1 %v2404_v45  ;;  %339 = vmatpush.msrb.mxu3 %v338_v22  ;;  %v2573_v7 = vsub.f32 %v190_v28, %v2545_v40  ;;  %v2575_v8 = vand.u32 4294901760, %v188_v42  ;;  %v2582_v10 = vand.u32 4294901760, %v219_v62  ;;  %v368_v12 = vand.u32 4294901760, %v367_v43 }
  0x1a   :  { %428 = vmatpush.msra.mxu0 %v2435_v57  ;;  %286 = vmatpush.msrb.mxu2 %v2422_v52  ;;  %v379_v13 = vsub.f32 %v2528_v31, %v4002_v48  ;;  %v4000_v14 = vand.u32 4294901760, %v2558_v49  ;;  %v2590_v15 = vsub.f32 %v189_v35, %v2560_v50  ;;  %v2597_v21 = vand.u32 4294901760, %v218_v9 }
  0x1b   :  { %478 = vmatpush.msra.mxu1 %v2406_v46  ;;  %345 = vmatpush.msrb.mxu3 %v344_v29  ;;  %v374_v22 = vand.u32 4294901760, %v373_v5  ;;  %v385_v26 = vsub.f32 %v2543_v38, %v4001_v6  ;;  %v4004_v28 = vand.u32 4294901760, %v2573_v7  ;;  %v2605_v29 = vsub.f32 %v188_v42, %v2575_v8 }
  0x1c   :  { %431 = vmatpush.msra.mxu0 %v2438_v58  ;;  %288 = vmatpush.msrb.mxu2 %v2424_v53  ;;  %v2613_v35 = vsub.f32 %v219_v62, %v2582_v10  ;;  %v380_v42 = vand.u32 4294901760, %v379_v13  ;;  %v391_v43 = vsub.f32 %v2558_v49, %v4000_v14  ;;  %v2628_v62 = vsub.f32 %v218_v9, %v2597_v21 }
  0x1d   :  { %480 = vmatpush.msra.mxu1 %v2408_v47  ;;  %351 = vmatpush.msrb.mxu3 %v350_v36  ;;  %v2615_v36 = vand.u32 4294901760, %v217_v17  ;;  %v2630_v5 = vand.u32 4294901760, %v216_v33  ;;  %v386_v13 = vand.u32 4294901760, %v385_v26  ;;  %v397_v14 = vsub.f32 %v2573_v7, %v4004_v28 }
  0x1e   :  { %434 = vmatpush.msra.mxu0 %v2445_v60  ;;  %290 = vmatpush.msrb.mxu2 %v2426_v54  ;;  %v4009_v6 = vand.u32 4294901760, %v2605_v29  ;;  %v4011_v9 = vand.u32 4294901760, %v2613_v35  ;;  %v4057_v55 = vand.u32 4294901760, %v2420_v51 }
  0x1f   :  { %482 = vmatpush.msra.mxu1 %v2422_v52  ;;  %357 = vmatpush.msrb.mxu3 %v356_v41  ;;  %v215_v41 = vld [vmem:[%s3997_s3 + $0xd8] sm:$0xff]  ;;  %v2646_v37 = vsub.f32 %v217_v17, %v2615_v36  ;;  %v4015_v17 = vand.u32 4294901760, %v2628_v62 }
  0x20   :  { %437 = vmatpush.msra.mxu0 %v2448_v61  ;;  %292 = vmatpush.msrb.mxu2 %v2493_v16  ;;  %v2640_v48 = vand.u32 4294901760, %v215_v41 }
  0x21   :  { %484 = vmatpush.msra.mxu1 %v2424_v53  ;;  %363 = vmatpush.msrb.mxu3 %v362_v2  ;;  %v4006_v2 = vand.u32 4294901760, %v2590_v15 }
  0x22   :  { %440 = vmatpush.msra.mxu0 %v2465_v4  ;;  %294 = vmatpush.msrb.mxu2 %v2501_v20  ;;  %v2668_v19 = vsub.f32 %v215_v41, %v2640_v48 }
  0x23   :  { %486 = vmatpush.msra.mxu1 %v2426_v54  ;;  %369 = vmatpush.msrb.mxu3 %v368_v12  ;;  %v214_v12 = vld [vmem:[%s3997_s3 + $0xd0] sm:$0xff]  ;;  %v403_v26 = vsub.f32 %v2590_v15, %v4006_v2  ;;  %v409_v2 = vsub.f32 %v2605_v29, %v4009_v6 }
  0x24   :  { %443 = vmatpush.msra.mxu0 %v2508_v23  ;;  %296 = vmatpush.msrb.mxu2 %v2510_v24  ;;  %v2652_v28 = vand.u32 4294901760, %v214_v12  ;;  %v4020_v1 = vand.u32 4294901760, %v2668_v19 }
  0x25   :  { %488 = vmatpush.msra.mxu1 %v2493_v16  ;;  %375 = vmatpush.msrb.mxu3 %v374_v22  ;;  %v392_v22 = vand.u32 4294901760, %v391_v43  ;;  %v398_v43 = vand.u32 4294901760, %v397_v14  ;;  %v660_v14 = vsub.f32 %v2613_v35, %v4011_v9  ;;  %v404_v6 = vand.u32 4294901760, %v403_v26 }
  0x26   :  { %446 = vmatpush.msra.mxu0 %v2520_v27  ;;  %298 = vmatpush.msrb.mxu2 %v2512_v25  ;;  %v2683_v41 = vsub.f32 %v214_v12, %v2652_v28  ;;  %v666_v9 = vsub.f32 %v2628_v62, %v4015_v17  ;;  %v2695_v26 = vand.u32 4294901760, %v212_v11  ;;  %v410_v12 = vand.u32 4294901760, %v409_v2 }
  0x27   :  { %490 = vmatpush.msra.mxu1 %v2501_v20  ;;  %381 = vmatpush.msrb.mxu3 %v380_v42  ;;  %v2661_v42 = vsub.f32 %v216_v33, %v2630_v5  ;;  %v4017_v33 = vand.u32 4294901760, %v2646_v37  ;;  %v661_v63 = vand.u32 4294901760, %v660_v14  ;;  %v684_v59 = vsub.f32 %v2668_v19, %v4020_v1 }
  0x28   :  { %449 = vmatpush.msra.mxu0 %v2528_v31  ;;  %300 = vmatpush.msrb.mxu2 %v2530_v32  ;;  %v667_v14 = vand.u32 4294901760, %v666_v9 }
  0x29   :  { %492 = vmatpush.msra.mxu1 %v2510_v24  ;;  %387 = vmatpush.msrb.mxu3 %v386_v13  ;;  %v2679_v13 = vand.u32 4294901760, %v213_v30  ;;  %v672_v17 = vsub.f32 %v2646_v37, %v4017_v33  ;;  %v2724_v33 = vsub.f32 %v212_v11, %v2695_v26 }
  0x2a   :  { %452 = vmatpush.msra.mxu0 %v2543_v38  ;;  %302 = vmatpush.msrb.mxu2 %v2545_v40 }
  0x2b   :  { %494 = vmatpush.msra.mxu1 %v2512_v25  ;;  %393 = vmatpush.msrb.mxu3 %v392_v22  ;;  %v4019_v22 = vand.u32 4294901760, %v2661_v42  ;;  %v2709_v2 = vsub.f32 %v213_v30, %v2679_v13  ;;  %v673_v9 = vand.u32 4294901760, %v672_v17  ;;  %v701_v17 = vand.u32 4294901760, %v2724_v33 }
  0x2c   :  { %455 = vmatpush.msra.mxu0 %v2558_v49  ;;  %2256 = vmatmul.msk.bf16.vlgmr.msrb.gmra.mxu1 %vm91_vm0, %v2348_v18 }
  0x2d   :  { %496 = vmatpush.msra.mxu1 %v2530_v32  ;;  %399 = vmatpush.msrb.mxu3 %v398_v43  ;;  %v2711_v43 = vand.u32 4294901760, %v211_v3  ;;  %v678_v30 = vsub.f32 %v2661_v42, %v4019_v22  ;;  %v702_v51 = vsub.f32 %v2724_v33, %v701_v17 }
  0x2e   :  { %458 = vmatpush.msra.mxu0 %v2573_v7  ;;  %304 = vmatpush.msrb.mxu2 %v2560_v50 }
  0x2f   :  { %498 = vmatpush.msra.mxu1 %v2545_v40  ;;  %2255 = vmatmul.msk.bf16.vlgmr.msrb.gmra.mxu0 %vm91_vm0, %v2348_v18  ;;  %v209_v18 = vld [vmem:[%s3997_s3 + $0xa8] sm:$0xff]  ;;  %v2735_v22 = vsub.f32 %v211_v3, %v2711_v43  ;;  %v679_v1 = vand.u32 4294901760, %v678_v30 }
  0x30   :  { %461 = vmatpush.msra.mxu0 %v2590_v15  ;;  %405 = vmatpush.msrb.mxu3 %v404_v6  ;;  %v2726_v6 = vand.u32 4294901760, %v210_v0  ;;  %v2737_v11 = vand.u32 4294901760, %v209_v18 }
  0x31   :  { %500 = vmatpush.msra.mxu1 %v2560_v50  ;;  %306 = vmatpush.msrb.mxu2 %v2575_v8  ;;  %v707_v30 = vand.u32 4294901760, %v2735_v22 }
  0x32   :  { %464 = vmatpush.msra.mxu0 %v2605_v29  ;;  %411 = vmatpush.msrb.mxu3 %v410_v12  ;;  %v4055_v12 = vand.u32 4294901760, %v2402_v44  ;;  %v2748_v3 = vsub.f32 %v210_v0, %v2726_v6  ;;  %v4058_v44 = vand.u32 4294901760, %v2709_v2  ;;  %v4059_v0 = vand.u32 4294901760, %v2432_v56 }
  0x33   :  { %502 = vmatpush.msra.mxu1 %v2575_v8 }
  0x34   :  { %617 = vmatpush.msrb.mxu0 %v2582_v10  ;;  %580 = vmatpush.msra.mxu3 %v2377_v34  ;;  %v4056_v34 = vand.u32 4294901760, %v2683_v41 }
  0x35   :  { %662 = vmatpush.msrb.mxu1 %v661_v63  ;;  %513 = vmatpush.msra.mxu2 %v4055_v12  ;;  %v2759_v12 = vsub.f32 %v209_v18, %v2737_v11  ;;  %v4061_v18 = vand.u32 4294901760, %v2438_v58 }
  0x36   :  { %619 = vmatpush.msrb.mxu0 %v2597_v21  ;;  %582 = vmatpush.msra.mxu3 %v2388_v39  ;;  %v690_v63 = vsub.f32 %v2683_v41, %v4056_v34  ;;  %v685_v39 = vand.u32 4294901760, %v684_v59  ;;  %v4060_v59 = vand.u32 4294901760, %v2435_v57  ;;  %v703_v57 = vand.u32 4294901760, %v702_v51 }
  0x37   :  { %668 = vmatpush.msrb.mxu1 %v667_v14  ;;  %517 = vmatpush.msra.mxu2 %v4057_v55  ;;  %v696_v14 = vsub.f32 %v2709_v2, %v4058_v44  ;;  %v713_v55 = vand.u32 4294901760, %v2748_v3  ;;  %v4066_v44 = vand.u32 4294901760, %v2520_v27  ;;  %v207_v27 = vld [vmem:[%s3997_s3 + $0x98] sm:$0xff] }
  0x38   :  { %621 = vmatpush.msrb.mxu0 %v2615_v36  ;;  %584 = vmatpush.msra.mxu3 %v2404_v45  ;;  %v691_v45 = vand.u32 4294901760, %v690_v63 }
  0x39   :  { %674 = vmatpush.msrb.mxu1 %v673_v9  ;;  %521 = vmatpush.msra.mxu2 %v4059_v0  ;;  %v697_v56 = vand.u32 4294901760, %v696_v14  ;;  %v4062_v9 = vand.u32 4294901760, %v2445_v60  ;;  %v208_v60 = vld [vmem:[%s3997_s3 + $0xa0] sm:$0xff] }
  0x3a   :  { %623 = vmatpush.msrb.mxu0 %v2630_v5  ;;  %586 = vmatpush.msra.mxu3 %v2406_v46  ;;  %v708_v46 = vsub.f32 %v2735_v22, %v707_v30 }
  0x3b   :  { %680 = vmatpush.msrb.mxu1 %v679_v1  ;;  %525 = vmatpush.msra.mxu2 %v4060_v59  ;;  %v719_v1 = vand.u32 4294901760, %v2759_v12  ;;  %v204_v59 = vld [vmem:[%s3997_s3 + $0x80] sm:$0xff] }
  0x3c   :  { %625 = vmatpush.msrb.mxu0 %v2640_v48  ;;  %588 = vmatpush.msra.mxu3 %v2408_v47  ;;  %v714_v47 = vsub.f32 %v2748_v3, %v713_v55  ;;  %v709_v34 = vand.u32 4294901760, %v708_v46 }
  0x3d   :  { %686 = vmatpush.msrb.mxu1 %v685_v39  ;;  %529 = vmatpush.msra.mxu2 %v4061_v18  ;;  %v720_v58 = vsub.f32 %v2759_v12, %v719_v1 }
  0x3e   :  { %627 = vmatpush.msrb.mxu0 %v2652_v28  ;;  %590 = vmatpush.msra.mxu3 %v2422_v52  ;;  %v4063_v52 = vand.u32 4294901760, %v2448_v61  ;;  %v715_v63 = vand.u32 4294901760, %v714_v47  ;;  %v4065_v61 = vand.u32 4294901760, %v2508_v23  ;;  %v4070_v23 = vand.u32 4294901760, %v2573_v7  ;;  %v205_v7 = vld [vmem:[%s3997_s3 + $0x88] sm:$0xff] }
  0x3f   :  { %692 = vmatpush.msrb.mxu1 %v691_v45  ;;  %533 = vmatpush.msra.mxu2 %v4062_v9  ;;  %v721_v39 = vand.u32 4294901760, %v720_v58 }
  0x40   :  { %629 = vmatpush.msrb.mxu0 %v2679_v13  ;;  %592 = vmatpush.msra.mxu3 %v2424_v53  ;;  %v4064_v53 = vand.u32 4294901760, %v2465_v4  ;;  %v4067_v4 = vand.u32 4294901760, %v2528_v31  ;;  %v2832_v31 = vand.u32 4294901760, %v207_v27 }
  0x41   :  { %698 = vmatpush.msrb.mxu1 %v697_v56  ;;  %537 = vmatpush.msra.mxu2 %v4063_v52  ;;  %v2868_v56 = vand.u32 4294901760, %v204_v59 }
  0x42   :  { %631 = vmatpush.msrb.mxu0 %v2695_v26  ;;  %594 = vmatpush.msra.mxu3 %v2426_v54  ;;  %v2805_v54 = vand.u32 4294901760, %v208_v60 }
  0x43   :  { %704 = vmatpush.msrb.mxu1 %v703_v57  ;;  %541 = vmatpush.msra.mxu2 %v4064_v53  ;;  %v2879_v9 = vsub.f32 %v204_v59, %v2868_v56 }
  0x44   :  { %633 = vmatpush.msrb.mxu0 %v2711_v43  ;;  %596 = vmatpush.msra.mxu3 %v2493_v16  ;;  %v4068_v16 = vand.u32 4294901760, %v2543_v38  ;;  %v206_v38 = vld [vmem:[%s3997_s3 + $0x90] sm:$0xff] }
  0x45   :  { %710 = vmatpush.msrb.mxu1 %v709_v34  ;;  %545 = vmatpush.msra.mxu2 %v4065_v61  ;;  %v749_v52 = vand.u32 4294901760, %v2879_v9 }
  0x46   :  { %635 = vmatpush.msrb.mxu0 %v2726_v6  ;;  %598 = vmatpush.msra.mxu3 %v2501_v20  ;;  %v4069_v20 = vand.u32 4294901760, %v2558_v49  ;;  %v2842_v49 = vand.u32 4294901760, %v206_v38 }
  0x47   :  { %716 = vmatpush.msrb.mxu1 %v715_v63  ;;  %549 = vmatpush.msra.mxu2 %v4066_v44 }
  0x48   :  { %637 = vmatpush.msrb.mxu0 %v2737_v11  ;;  %600 = vmatpush.msra.mxu3 %v2510_v24  ;;  %v4071_v24 = vand.u32 4294901760, %v2590_v15  ;;  %v2858_v14 = vsub.f32 %v206_v38, %v2842_v49 }
  0x49   :  { %722 = vmatpush.msrb.mxu1 %v721_v39  ;;  %553 = vmatpush.msra.mxu2 %v4067_v4  ;;  %v173_v39 = vld [vmem:[%s3998_s1] sm:$0xff] }
  0x4a   :  { %639 = vmatpush.msrb.mxu0 %v2805_v54  ;;  %602 = vmatpush.msra.mxu3 %v2512_v25  ;;  %v4072_v25 = vand.u32 4294901760, %v2605_v29  ;;  %v2855_v29 = vand.u32 4294901760, %v205_v7  ;;  %v737_v51 = vand.u32 4294901760, %v2858_v14  ;;  %v176_v61 = vunpack.c.l.bf16 %v173_v39 }
  0x4b   :  { %557 = vmatpush.msra.mxu2 %v4068_v16 }
  0x4c   :  { %604 = vmatpush.msra.mxu3 %v2530_v32  ;;  %v2835_v32 = vsub.f32 %v208_v60, %v2805_v54  ;;  %641 = vmatpush.msrb.mxu0 %v2832_v31  ;;  %v2871_v46 = vsub.f32 %v205_v7, %v2855_v29  ;;  %v738_v57 = vsub.f32 %v2858_v14, %v737_v51 }
  0x4d   :  { %561 = vmatpush.msra.mxu2 %v4069_v20  ;;  %v750_v60 = vsub.f32 %v2879_v9, %v749_v52 }
  0x4e   :  { %606 = vmatpush.msra.mxu3 %v2545_v40  ;;  %v725_v40 = vand.u32 4294901760, %v2835_v32  ;;  %643 = vmatpush.msrb.mxu0 %v2842_v49  ;;  %v743_v47 = vand.u32 4294901760, %v2871_v46  ;;  %v739_v34 = vand.u32 4294901760, %v738_v57 }
  0x4f   :  { %565 = vmatpush.msra.mxu2 %v4070_v23  ;;  %v751_v53 = vand.u32 4294901760, %v750_v60 }
  0x50   :  { %608 = vmatpush.msra.mxu3 %v2560_v50  ;;  %v2845_v50 = vsub.f32 %v207_v27, %v2832_v31  ;;  %645 = vmatpush.msrb.mxu0 %v2855_v29  ;;  %v744_v58 = vsub.f32 %v2871_v46, %v743_v47  ;;  %v4073_v27 = vand.u32 4294901760, %v2613_v35 }
  0x51   :  { %569 = vmatpush.msra.mxu2 %v4071_v24  ;;  %v177_v24 = vunpack.c.h.bf16 %v173_v39  ;;  %v230_v39 = vld [vmem:[%s3997_s3 + $0x150] sm:$0xff] }
  0x52   :  { %610 = vmatpush.msra.mxu3 %v2575_v8  ;;  %v726_v8 = vsub.f32 %v2835_v32, %v725_v40  ;;  %v731_v15 = vand.u32 4294901760, %v2845_v50  ;;  %647 = vmatpush.msrb.mxu0 %v2868_v56  ;;  %v745_v63 = vand.u32 4294901760, %v744_v58 }
  0x53   :  { %573 = vmatpush.msra.mxu2 %v4072_v25 }
  0x54   :  { %v727_v0 = vand.u32 4294901760, %v726_v8  ;;  %v732_v45 = vsub.f32 %v2845_v50, %v731_v15 }
  0x56   :  { %728 = vmatpush.msrb.mxu1 %v727_v0  ;;  %v733_v18 = vand.u32 4294901760, %v732_v45  ;;  %v4074_v0 = vand.u32 4294901760, %v2628_v62 }
  0x58   :  { %734 = vmatpush.msrb.mxu1 %v733_v18  ;;  %v4075_v18 = vand.u32 4294901760, %v2646_v37 }
  0x5a   :  { %740 = vmatpush.msrb.mxu1 %v739_v34  ;;  %v4076_v34 = vand.u32 4294901760, %v2661_v42 }
  0x5c   :  { %746 = vmatpush.msrb.mxu1 %v745_v63 }
  0x5e   :  { %752 = vmatpush.msrb.mxu1 %v751_v53  ;;  %v231_v53 = vld [vmem:[%s3997_s3 + $0x158] sm:$0xff] }
  0x88   :  { %v104_v44 = vpop.f32.mrf.mxu0 }
  0x89   :  { %v182_v4 = vmul.f32 %v176_v61, %v104_v44  ;;  %v229_v61 = vld [vmem:[%s3997_s3 + $0x148] sm:$0xff] }
  0x8b   :  { %v117_v16 = vpop.f32.mrf.mxu1  ;;  %v307_v20 = vand.u32 4294901760, %v182_v4 }
  0x8c   :  { %v183_v8 = vmul.f32 %v177_v24, %v117_v16  ;;  %v227_v16 = vld [vmem:[%s3997_s3 + $0x138] sm:$0xff] }
  0x8d   :  { %v308_v23 = vsub.f32 %v182_v4, %v307_v20  ;;  %413 = vmatmul.f32.vlgmr.msrb.gmra.mxu3 %v307_v20  ;;  %v3015_v4 = vand.u32 4294901760, %v229_v61 }
  0x8e   :  { %813 = vmatpush.msrb.mxu3 %v2582_v10  ;;  %v2903_v57 = vand.u32 4294901760, %v183_v8 }
  0x8f   :  { %v309_v25 = vand.u32 4294901760, %v308_v23  ;;  %467 = vmatmul.f32.vlgmr.msra.gmra.mxu0 %v308_v23 }
  0x90   :  { %815 = vmatpush.msrb.mxu3 %v2597_v21  ;;  %854 = vmatpush.msra.mxu0 %v4073_v27  ;;  %v106_v38 = vpop.f32.mrf.mxu0  ;;  %v226_v27 = vld [vmem:[%s3997_s3 + $0x130] sm:$0xff] }
  0x91   :  { %506 = vmatmul.f32.vlgmr.msra.gmra.mxu1 %v309_v25  ;;  %v310_v7 = vsub.f32 %v308_v23, %v309_v25  ;;  %v3048_v25 = vand.u32 4294901760, %v227_v16 }
  0x92   :  { %817 = vmatpush.msrb.mxu3 %v2615_v36  ;;  %858 = vmatpush.msra.mxu0 %v4074_v0 }
  0x93   :  { %v119_v45 = vpop.f32.mrf.mxu1  ;;  %921 = vmatpush.msra.mxu1 %v2582_v10  ;;  %v311_v59 = vand.u32 4294901760, %v310_v7  ;;  %v4077_v10 = vand.u32 4294901760, %v2668_v19 }
  0x94   :  { %819 = vmatpush.msrb.mxu3 %v2630_v5  ;;  %862 = vmatpush.msra.mxu0 %v4075_v18  ;;  %v3079_v45 = vsub.f32 %v227_v16, %v3048_v25 }
  0x95   :  { %923 = vmatpush.msra.mxu1 %v2597_v21  ;;  %312 = vmatmul.f32.vlgmr.msrb.gmra.mxu2 %v311_v59  ;;  %v2915_v21 = vsub.f32 %v183_v8, %v2903_v57 }
  0x96   :  { %612 = vmatmul.f32.vlgmr.msra.gmra.mxu3 %v307_v20  ;;  %760 = vmatpush.msrb.mxu2 %v2613_v35  ;;  %v235_v35 = vld [vmem:[%s3997_s3 + $0x178] sm:$0xff] }
  0x97   :  { %821 = vmatpush.msrb.mxu3 %v2640_v48  ;;  %866 = vmatpush.msra.mxu0 %v4076_v34  ;;  %v2930_v58 = vand.u32 4294901760, %v235_v35  ;;  %v650_v63 = vand.u32 4294901760, %v2915_v21  ;;  %v223_v34 = vld [vmem:[%s3997_s3 + $0x118] sm:$0xff] }
  0x98   :  { %925 = vmatpush.msra.mxu1 %v2615_v36  ;;  %763 = vmatpush.msrb.mxu2 %v2628_v62  ;;  %v4078_v36 = vand.u32 4294901760, %v2683_v41  ;;  %v234_v62 = vld [vmem:[%s3997_s3 + $0x170] sm:$0xff] }
  0x99   :  { %823 = vmatpush.msrb.mxu3 %v2652_v28  ;;  %870 = vmatpush.msra.mxu0 %v4077_v10  ;;  %v2940_v60 = vand.u32 4294901760, %v234_v62 }
  0x9a   :  { %927 = vmatpush.msra.mxu1 %v2630_v5  ;;  %766 = vmatpush.msrb.mxu2 %v2646_v37  ;;  %v4079_v37 = vand.u32 4294901760, %v2709_v2  ;;  %v233_v5 = vld [vmem:[%s3997_s3 + $0x168] sm:$0xff] }
  0x9b   :  { %825 = vmatpush.msrb.mxu3 %v2679_v13  ;;  %874 = vmatpush.msra.mxu0 %v4078_v36 }
  0x9c   :  { %929 = vmatpush.msra.mxu1 %v2640_v48  ;;  %769 = vmatpush.msrb.mxu2 %v2661_v42  ;;  %v232_v48 = vld [vmem:[%s3997_s3 + $0x160] sm:$0xff]  ;;  %v2951_v42 = vsub.f32 %v235_v35, %v2930_v58 }
  0x9d   :  { %827 = vmatpush.msrb.mxu3 %v2695_v26  ;;  %878 = vmatpush.msra.mxu0 %v4079_v37  ;;  %v222_v37 = vld [vmem:[%s3997_s3 + $0x110] sm:$0xff] }
  0x9e   :  { %931 = vmatpush.msra.mxu1 %v2652_v28  ;;  %575 = vmatmul.f32.vlgmr.msra.gmra.mxu2 %v307_v20  ;;  %v2953_v28 = vand.u32 4294901760, %v233_v5 }
  0x9f   :  { %772 = vmatpush.msrb.mxu2 %v2668_v19  ;;  %829 = vmatpush.msrb.mxu3 %v2711_v43  ;;  %v651_v19 = vsub.f32 %v2915_v21, %v650_v63 }
  0xa0   :  { %882 = vmatpush.msra.mxu0 %v701_v17  ;;  %933 = vmatpush.msra.mxu1 %v2679_v13  ;;  %v2967_v13 = vsub.f32 %v234_v62, %v2940_v60  ;;  %v2969_v17 = vand.u32 4294901760, %v232_v48  ;;  %v4028_v62 = vand.u32 4294901760, %v3079_v45 }
  0xa1   :  { %775 = vmatpush.msrb.mxu2 %v2683_v41  ;;  %831 = vmatpush.msrb.mxu3 %v2726_v6  ;;  %v4041_v41 = vand.u32 4294901760, %v2951_v42 }
  0xa2   :  { %886 = vmatpush.msra.mxu0 %v707_v30  ;;  %935 = vmatpush.msra.mxu1 %v2695_v26  ;;  %v2978_v30 = vsub.f32 %v233_v5, %v2953_v28  ;;  %v2980_v26 = vand.u32 4294901760, %v231_v53 }
  0xa3   :  { %778 = vmatpush.msrb.mxu2 %v2709_v2  ;;  %833 = vmatpush.msrb.mxu3 %v2737_v11  ;;  %v652_v2 = vand.u32 4294901760, %v651_v19 }
  0xa4   :  { %890 = vmatpush.msra.mxu0 %v713_v55  ;;  %937 = vmatpush.msra.mxu1 %v2711_v43  ;;  %v4039_v43 = vand.u32 4294901760, %v2967_v13  ;;  %v2992_v55 = vsub.f32 %v232_v48, %v2969_v17  ;;  %v3009_v44 = vsub.f32 %v231_v53, %v2980_v26  ;;  %v3115_v48 = vand.u32 4294901760, %v223_v34  ;;  %v221_v53 = vld [vmem:[%s3997_s3 + $0x108] sm:$0xff] }
  0xa5   :  { %781 = vmatpush.msrb.mxu2 %v2724_v33  ;;  %835 = vmatpush.msrb.mxu3 %v2805_v54  ;;  %v2999_v33 = vand.u32 4294901760, %v230_v39 }
  0xa6   :  { %894 = vmatpush.msra.mxu0 %v719_v1  ;;  %939 = vmatpush.msra.mxu1 %v2726_v6  ;;  %v1001_v6 = vsub.f32 %v2951_v42, %v4041_v41  ;;  %v4038_v1 = vand.u32 4294901760, %v2978_v30  ;;  %v3145_v16 = vsub.f32 %v223_v34, %v3115_v48 }
  0xa7   :  { %784 = vmatpush.msrb.mxu2 %v2735_v22  ;;  %837 = vmatpush.msrb.mxu3 %v2832_v31  ;;  %v228_v22 = vld [vmem:[%s3997_s3 + $0x140] sm:$0xff] }
  0xa8   :  { %898 = vmatpush.msra.mxu0 %v725_v40  ;;  %941 = vmatpush.msra.mxu1 %v2737_v11  ;;  %v1007_v11 = vsub.f32 %v2967_v13, %v4039_v43  ;;  %v4036_v40 = vand.u32 4294901760, %v2992_v55  ;;  %v3032_v20 = vand.u32 4294901760, %v228_v22  ;;  %v1002_v23 = vand.u32 4294901760, %v1001_v6  ;;  %v241_v43 = vld [vmem:[%s3997_s3 + $0x1a8] sm:$0xff] }
  0xa9   :  { %653 = vmatmul.f32.vlgmr.msrb.gmra.mxu0 %v652_v2  ;;  %787 = vmatpush.msrb.mxu2 %v2748_v3  ;;  %v3030_v3 = vsub.f32 %v230_v39, %v2999_v33  ;;  %v1013_v24 = vsub.f32 %v2978_v30, %v4038_v1  ;;  %v1049_v6 = vsub.f32 %v3079_v45, %v4028_v62  ;;  %v3358_v1 = vpop.f32.mrf.mxu3 }
  0xaa   :  { %839 = vmatpush.msrb.mxu3 %v2842_v49  ;;  %902 = vmatpush.msra.mxu0 %v731_v15  ;;  %v3034_v15 = vpop.f32.mrf.mxu2  ;;  %v1008_v38 = vand.u32 4294901760, %v1007_v11  ;;  %v3063_v7 = vsub.f32 %v228_v22, %v3032_v20  ;;  %v220_v22 = vld [vmem:[%s3997_s3 + $0x100] sm:$0xff] }
  0xab   :  { %943 = vmatpush.msra.mxu1 %v2805_v54  ;;  %790 = vmatpush.msrb.mxu2 %v2759_v12  ;;  %v4034_v54 = vand.u32 4294901760, %v3009_v44  ;;  %v3046_v12 = vsub.f32 %v229_v61, %v3015_v4  ;;  %v1014_v8 = vand.u32 4294901760, %v1013_v24  ;;  %v3130_v61 = vand.u32 4294901760, %v222_v37 }
  0xac   :  { %754 = vmatmul.f32.vlgmr.msrb.gmra.mxu1 %v2903_v57  ;;  %841 = vmatpush.msrb.mxu3 %v2855_v29 }
  0xad   :  { %906 = vmatpush.msra.mxu0 %v737_v51  ;;  %945 = vmatpush.msra.mxu1 %v2832_v31  ;;  %v1019_v51 = vsub.f32 %v2992_v55, %v4036_v40  ;;  %v4032_v31 = vand.u32 4294901760, %v3030_v3  ;;  %v1025_v0 = vsub.f32 %v3009_v44, %v4034_v54  ;;  %v242_v40 = vld [vmem:[%s3997_s3 + $0x1b0] sm:$0xff] }
  0xae   :  { %793 = vmatpush.msrb.mxu2 %v2835_v32  ;;  %843 = vmatpush.msrb.mxu3 %v2868_v56  ;;  %v225_v32 = vld [vmem:[%s3997_s3 + $0x128] sm:$0xff] }
  0xaf   :  { %910 = vmatpush.msra.mxu0 %v743_v47  ;;  %947 = vmatpush.msra.mxu1 %v2842_v49  ;;  %v3072_v47 = vand.u32 4294901760, %v226_v27  ;;  %v4031_v49 = vand.u32 4294901760, %v3046_v12  ;;  %v1020_v59 = vand.u32 4294901760, %v1019_v51  ;;  %v3085_v18 = vand.u32 4294901760, %v225_v32 }
  0xb0   :  { %1003 = vmatpush.msra.mxu3 %v1002_v23  ;;  %796 = vmatpush.msrb.mxu2 %v2845_v50  ;;  %v224_v50 = vld [vmem:[%s3997_s3 + $0x120] sm:$0xff]  ;;  %v1026_v35 = vand.u32 4294901760, %v1025_v0  ;;  %v3147_v23 = vand.u32 4294901760, %v221_v53  ;;  %v3164_v51 = vand.u32 4294901760, %v220_v22  ;;  %v4024_v0 = vand.u32 4294901760, %v3145_v16 }
  0xb1   :  { %914 = vmatpush.msra.mxu0 %v749_v52  ;;  %949 = vmatpush.msra.mxu1 %v2855_v29  ;;  %v1031_v29 = vsub.f32 %v3030_v3, %v4032_v31  ;;  %v4029_v52 = vand.u32 4294901760, %v3063_v7  ;;  %v3098_v36 = vsub.f32 %v226_v27, %v3072_v47  ;;  %v3113_v5 = vsub.f32 %v225_v32, %v3085_v18  ;;  %v3153_v27 = vld [vmem:[%s3998_s1 + $0x8] sm:$0xff]  ;;  %v243_v31 = vld [vmem:[%s3997_s3 + $0x1b8] sm:$0xff] }
  0xb2   :  { %1009 = vmatpush.msra.mxu3 %v1008_v38  ;;  %799 = vmatpush.msrb.mxu2 %v2858_v14  ;;  %v132_v10 = vpop.f32.mrf.mxu2  ;;  %v3100_v14 = vand.u32 4294901760, %v224_v50  ;;  %v3162_v38 = vsub.f32 %v222_v37, %v3130_v61  ;;  %v1050_v32 = vand.u32 4294901760, %v1049_v6 }
  0xb3   :  { %1101 = vmatpush.msrb.mxu0 %v2951_v42  ;;  %951 = vmatpush.msra.mxu1 %v2868_v56  ;;  %v1037_v56 = vsub.f32 %v3046_v12, %v4031_v49  ;;  %v1043_v19 = vsub.f32 %v3063_v7, %v4029_v52  ;;  %v4027_v39 = vand.u32 4294901760, %v3098_v36  ;;  %v4026_v11 = vand.u32 4294901760, %v3113_v5  ;;  %v244_v52 = vld [vmem:[%s3997_s3 + $0x1c0] sm:$0xff] }
  0xb4   :  { %1015 = vmatpush.msra.mxu3 %v1014_v8  ;;  %802 = vmatpush.msrb.mxu2 %v2871_v46  ;;  %v1032_v46 = vand.u32 4294901760, %v1031_v29  ;;  %v3128_v2 = vsub.f32 %v224_v50, %v3100_v14  ;;  %v178_v50 = vunpack.c.l.bf16 %v3153_v27  ;;  %v4021_v10 = vand.u32 4294901760, %v3162_v38 }
  0xb5   :  { %1104 = vmatpush.msrb.mxu0 %v2967_v13  ;;  %1154 = vmatpush.msrb.mxu1 %v2930_v58  ;;  %v1044_v24 = vand.u32 4294901760, %v1043_v19  ;;  %v1061_v8 = vsub.f32 %v3113_v5, %v4026_v11  ;;  %v245_v11 = vld [vmem:[%s3997_s3 + $0x1c8] sm:$0xff]  ;;  %v3310_v54 = vand.u32 4294901760, %v244_v52 }
  0xb6   :  { %1021 = vmatpush.msra.mxu3 %v1020_v59  ;;  %805 = vmatpush.msrb.mxu2 %v2879_v9  ;;  %v1038_v9 = vand.u32 4294901760, %v1037_v56  ;;  %v3175_v59 = vsub.f32 %v221_v53, %v3147_v23  ;;  %v251_v56 = vld [vmem:[%s3997_s3 + $0x1f8] sm:$0xff]  ;;  %v184_v19 = vmul.f32 %v178_v50, %v3034_v15  ;;  %v1079_v15 = vsub.f32 %v3162_v38, %v4021_v10  ;;  %v248_v10 = vld [vmem:[%s3997_s3 + $0x1e0] sm:$0xff] }
  0xb7   :  { %1107 = vmatpush.msrb.mxu0 %v2978_v30  ;;  %1156 = vmatpush.msrb.mxu1 %v2940_v60  ;;  %v1062_v37 = vand.u32 4294901760, %v1061_v8  ;;  %v3203_v6 = vand.u32 4294901760, %v251_v56 }
  0xb8   :  { %808 = vmatmul.f32.vlgmr.msrb.gmra.mxu2 %v2915_v21  ;;  %1027 = vmatpush.msra.mxu3 %v1026_v35  ;;  %v1055_v21 = vsub.f32 %v3098_v36, %v4027_v39  ;;  %v3185_v35 = vsub.f32 %v220_v22, %v3164_v51  ;;  %v4022_v53 = vand.u32 4294901760, %v3175_v59  ;;  %v3218_v50 = vand.u32 4294901760, %v184_v19 }
  0xb9   :  { %958 = vmatpush.msra.mxu2 %v2930_v58  ;;  %1110 = vmatpush.msrb.mxu0 %v2992_v55 }
  0xba   :  { %1158 = vmatpush.msrb.mxu1 %v2953_v28  ;;  %847 = vmatmul.f32.vlgmr.msrb.gmra.mxu3 %v650_v63  ;;  %v4025_v63 = vand.u32 4294901760, %v3128_v2  ;;  %v1056_v29 = vand.u32 4294901760, %v1055_v21 }
  0xbb   :  { %960 = vmatpush.msra.mxu2 %v2940_v60  ;;  %1033 = vmatpush.msra.mxu3 %v1032_v46  ;;  %v1073_v46 = vsub.f32 %v3145_v16, %v4024_v0  ;;  %v246_v0 = vld [vmem:[%s3997_s3 + $0x1d0] sm:$0xff] }
  0xbc   :  { %1113 = vmatpush.msrb.mxu0 %v3009_v44  ;;  %1160 = vmatpush.msrb.mxu1 %v2969_v17  ;;  %v1067_v34 = vsub.f32 %v3128_v2, %v4025_v63 }
  0xbd   :  { %962 = vmatpush.msra.mxu2 %v2953_v28  ;;  %1039 = vmatpush.msra.mxu3 %v1038_v9  ;;  %v250_v9 = vld [vmem:[%s3997_s3 + $0x1f0] sm:$0xff]  ;;  %v1074_v8 = vand.u32 4294901760, %v1073_v46 }
  0xbe   :  { %1116 = vmatpush.msrb.mxu0 %v3030_v3  ;;  %1162 = vmatpush.msrb.mxu1 %v2980_v26  ;;  %v1068_v22 = vand.u32 4294901760, %v1067_v34  ;;  %v3212_v21 = vand.u32 4294901760, %v250_v9  ;;  %v3226_v34 = vsub.f32 %v251_v56, %v3203_v6 }
  0xbf   :  { %964 = vmatpush.msra.mxu2 %v2969_v17  ;;  %1045 = vmatpush.msra.mxu3 %v1044_v24  ;;  %v4023_v24 = vand.u32 4294901760, %v3185_v35 }
  0xc0   :  { %1119 = vmatpush.msrb.mxu0 %v3046_v12  ;;  %1164 = vmatpush.msrb.mxu1 %v2999_v33  ;;  %v3240_v56 = vsub.f32 %v250_v9, %v3212_v21  ;;  %v4030_v9 = vand.u32 4294901760, %v3226_v34 }
  0xc1   :  { %966 = vmatpush.msra.mxu2 %v2980_v26  ;;  %1051 = vmatpush.msra.mxu3 %v1050_v32  ;;  %v249_v32 = vld [vmem:[%s3997_s3 + $0x1e8] sm:$0xff] }
  0xc2   :  { %1122 = vmatpush.msrb.mxu0 %v3063_v7  ;;  %1166 = vmatpush.msrb.mxu1 %v3015_v4  ;;  %v3235_v46 = vand.u32 4294901760, %v249_v32  ;;  %v4033_v63 = vand.u32 4294901760, %v3240_v56 }
  0xc3   :  { %916 = vmatmul.f32.vlgmr.msra.gmra.mxu0 %v2903_v57  ;;  %968 = vmatpush.msra.mxu2 %v2999_v33 }
  0xc4   :  { %1057 = vmatpush.msra.mxu3 %v1056_v29  ;;  %1125 = vmatpush.msrb.mxu0 %v3079_v45  ;;  %v1085_v29 = vsub.f32 %v3175_v59, %v4022_v53  ;;  %v247_v53 = vld [vmem:[%s3997_s3 + $0x1d8] sm:$0xff] }
  0xc5   :  { %1168 = vmatpush.msrb.mxu1 %v3032_v20  ;;  %970 = vmatpush.msra.mxu2 %v3015_v4 }
  0xc6   :  { %953 = vmatmul.f32.vlgmr.msra.gmra.mxu1 %v2903_v57  ;;  %1063 = vmatpush.msra.mxu3 %v1062_v37  ;;  %v1080_v57 = vand.u32 4294901760, %v1079_v15  ;;  %v1091_v37 = vsub.f32 %v3185_v35, %v4023_v24  ;;  %v1086_v15 = vand.u32 4294901760, %v1085_v29  ;;  %v3249_v24 = vand.u32 4294901760, %v248_v10 }
  0xc7   :  { %1128 = vmatpush.msrb.mxu0 %v3098_v36  ;;  %1170 = vmatpush.msrb.mxu1 %v3048_v25  ;;  %v3261_v29 = vand.u32 4294901760, %v247_v53 }
  0xc8   :  { %972 = vmatpush.msra.mxu2 %v3032_v20  ;;  %1069 = vmatpush.msra.mxu3 %v1068_v22  ;;  %v3247_v22 = vsub.f32 %v184_v19, %v3218_v50  ;;  %v3259_v19 = vsub.f32 %v249_v32, %v3235_v46  ;;  %v3272_v32 = vsub.f32 %v248_v10, %v3249_v24  ;;  %v3286_v10 = vand.u32 4294901760, %v245_v11 }
  0xc9   :  { %1131 = vmatpush.msrb.mxu0 %v3113_v5  ;;  %1172 = vmatpush.msrb.mxu1 %v3072_v47 }
  0xca   :  { %974 = vmatpush.msra.mxu2 %v3048_v25  ;;  %1075 = vmatpush.msra.mxu3 %v1074_v8  ;;  %v1092_v8 = vand.u32 4294901760, %v1091_v37  ;;  %v4035_v39 = vand.u32 4294901760, %v3247_v22  ;;  %v1342_v37 = vsub.f32 %v3226_v34, %v4030_v9  ;;  %v4037_v62 = vand.u32 4294901760, %v3259_v19 }
  0xcb   :  { %1134 = vmatpush.msrb.mxu0 %v3128_v2  ;;  %1174 = vmatpush.msrb.mxu1 %v3085_v18  ;;  %v1348_v9 = vsub.f32 %v3240_v56, %v4033_v63 }
  0xcc   :  { %976 = vmatpush.msra.mxu2 %v3072_v47  ;;  %1081 = vmatpush.msra.mxu3 %v1080_v57  ;;  %v3274_v57 = vand.u32 4294901760, %v246_v0  ;;  %v1343_v63 = vand.u32 4294901760, %v1342_v37  ;;  %v3326_v37 = vand.u32 4294901760, %v243_v31 }
  0xcd   :  { %1137 = vmatpush.msrb.mxu0 %v3145_v16  ;;  %1176 = vmatpush.msrb.mxu1 %v3100_v14 }
  0xce   :  { %978 = vmatpush.msra.mxu2 %v3085_v18  ;;  %1087 = vmatpush.msra.mxu3 %v1086_v15  ;;  %v3284_v15 = vsub.f32 %v247_v53, %v3261_v29  ;;  %v4040_v53 = vand.u32 4294901760, %v3272_v32  ;;  %v3303_v49 = vsub.f32 %v246_v0, %v3274_v57 }
  0xcf   :  { %1140 = vmatpush.msrb.mxu0 %v3162_v38  ;;  %1178 = vmatpush.msrb.mxu1 %v3115_v48 }
  0xd0   :  { %980 = vmatpush.msra.mxu2 %v3100_v14  ;;  %1093 = vmatpush.msra.mxu3 %v1092_v8  ;;  %4080 = vst [vmem:[#allocation2_spill] sm:$0xff] %v3284_v15  ;;  %v992_v8 = vsub.f32 %v3247_v22, %v4035_v39  ;;  %v4042_v0 = vand.u32 4294901760, %v3284_v15  ;;  %v3319_v39 = vsub.f32 %v245_v11, %v3286_v10 }
  0xd1   :  { %1143 = vmatpush.msrb.mxu0 %v3175_v59  ;;  %1180 = vmatpush.msrb.mxu1 %v3130_v61  ;;  %4081 = vst [vmem:[#allocation3_spill] sm:$0xff] %v3303_v49  ;;  %v1360_v11 = vsub.f32 %v3272_v32, %v4040_v53 }
  0xd2   :  { %1262 = vmatpush.msrb.mxu3 %v2930_v58  ;;  %982 = vmatpush.msra.mxu2 %v3115_v48  ;;  %v1354_v58 = vsub.f32 %v3259_v19, %v4037_v62  ;;  %v993_v62 = vand.u32 4294901760, %v992_v8  ;;  %v1366_v53 = vsub.f32 %v3284_v15, %v4042_v0  ;;  %v4082_v0 = vand.u32 4294901760, %v3303_v49 }
  0xd3   :  { %1146 = vmatpush.msrb.mxu0 %v3185_v35  ;;  %1182 = vmatpush.msrb.mxu1 %v3147_v23  ;;  %v4083_v15 = vand.u32 4294901760, %v2951_v42  ;;  %v238_v42 = vld [vmem:[%s3997_s3 + $0x190] sm:$0xff] }
  0xd4   :  { %1264 = vmatpush.msrb.mxu3 %v2940_v60  ;;  %984 = vmatpush.msra.mxu2 %v3130_v61  ;;  %v1349_v60 = vand.u32 4294901760, %v1348_v9  ;;  %v3339_v9 = vsub.f32 %v244_v52, %v3310_v54  ;;  %v1355_v8 = vand.u32 4294901760, %v1354_v58  ;;  %v3354_v52 = vsub.f32 %v243_v31, %v3326_v37 }
  0xd5   :  { %1299 = vmatpush.msra.mxu0 %v3203_v6  ;;  %1184 = vmatpush.msrb.mxu1 %v3164_v51  ;;  %v1361_v58 = vand.u32 4294901760, %v1360_v11  ;;  %v1372_v41 = vsub.f32 %v3303_v49, %v4082_v0  ;;  %v1367_v0 = vand.u32 4294901760, %v1366_v53  ;;  %v4084_v11 = vand.u32 4294901760, %v3319_v39 }
  0xd6   :  { %1266 = vmatpush.msrb.mxu3 %v2953_v28  ;;  %986 = vmatpush.msra.mxu2 %v3147_v23  ;;  %v3341_v28 = vand.u32 4294901760, %v242_v40 }
  0xd7   :  { %1301 = vmatpush.msra.mxu0 %v3212_v21  ;;  %1344 = vmatpush.msra.mxu1 %v1343_v63  ;;  %v240_v63 = vld [vmem:[%s3997_s3 + $0x1a0] sm:$0xff]  ;;  %v1378_v49 = vsub.f32 %v3319_v39, %v4084_v11  ;;  %v1373_v53 = vand.u32 4294901760, %v1372_v41  ;;  %v4086_v11 = vand.u32 4294901760, %v2978_v30  ;;  %v237_v41 = vld [vmem:[%s3997_s3 + $0x188] sm:$0xff] }
  0xd8   :  { %1268 = vmatpush.msrb.mxu3 %v2969_v17  ;;  %988 = vmatpush.msra.mxu2 %v3164_v51  ;;  %v3356_v17 = vand.u32 4294901760, %v241_v43 }
  0xd9   :  { %1303 = vmatpush.msra.mxu0 %v3235_v46  ;;  %1350 = vmatpush.msra.mxu1 %v1349_v60  ;;  %v239_v60 = vld [vmem:[%s3997_s3 + $0x198] sm:$0xff]  ;;  %v1379_v30 = vand.u32 4294901760, %v1378_v49 }
  0xda   :  { %994 = vmatmul.f32.vlgmr.msra.gmra.mxu2 %v993_v62  ;;  %1270 = vmatpush.msrb.mxu3 %v2980_v26  ;;  %v3372_v62 = vsub.f32 %v242_v40, %v3341_v28  ;;  %v3374_v26 = vand.u32 4294901760, %v240_v63  ;;  %v3390_v31 = vand.u32 4294901760, %v239_v60  ;;  %v3403_v40 = vand.u32 4294901760, %v238_v42 }
  0xdb   :  { %1195 = vmatpush.msrb.mxu2 %v4083_v15  ;;  %1305 = vmatpush.msra.mxu0 %v3249_v24  ;;  %v4085_v15 = vand.u32 4294901760, %v2967_v13  ;;  %v4087_v13 = vand.u32 4294901760, %v3339_v9 }
  0xdc   :  { %1356 = vmatpush.msra.mxu1 %v1355_v8  ;;  %1095 = vmatmul.f32.vlgmr.msra.gmra.mxu3 %v3218_v50  ;;  %v3388_v8 = vsub.f32 %v241_v43, %v3356_v17  ;;  %v3401_v43 = vsub.f32 %v240_v63, %v3374_v26 }
  0xdd   :  { %1199 = vmatpush.msrb.mxu2 %v4085_v15  ;;  %1272 = vmatpush.msrb.mxu3 %v2999_v33  ;;  %v1384_v33 = vsub.f32 %v3339_v9, %v4087_v13  ;;  %v3417_v13 = vsub.f32 %v239_v60, %v3390_v31  ;;  %v236_v15 = vld [vmem:[%s3997_s3 + $0x180] sm:$0xff] }
  0xde   :  { %1307 = vmatpush.msra.mxu0 %v3261_v29  ;;  %1362 = vmatpush.msra.mxu1 %v1361_v58  ;;  %v4089_v58 = vand.u32 4294901760, %v3354_v52 }
  0xdf   :  { %1203 = vmatpush.msrb.mxu2 %v4086_v11  ;;  %1274 = vmatpush.msrb.mxu3 %v3015_v4  ;;  %v4088_v4 = vand.u32 4294901760, %v2992_v55  ;;  %v3423_v55 = vand.u32 4294901760, %v237_v41  ;;  %v1385_v49 = vand.u32 4294901760, %v1384_v33  ;;  %v3433_v11 = vsub.f32 %v238_v42, %v3403_v40 }
  0xe0   :  { %1309 = vmatpush.msra.mxu0 %v3274_v57  ;;  %1368 = vmatpush.msra.mxu1 %v1367_v0  ;;  %v1390_v63 = vsub.f32 %v3354_v52, %v4089_v58  ;;  %v145_v0 = vpop.f32.mrf.mxu3  ;;  %v1407_v58 = vand.u32 4294901760, %v3401_v43  ;;  %v4093_v33 = vand.u32 4294901760, %v3388_v8 }
  0xe1   :  { %1207 = vmatpush.msrb.mxu2 %v4088_v4  ;;  %1276 = vmatpush.msrb.mxu3 %v3032_v20  ;;  %v4090_v20 = vand.u32 4294901760, %v3009_v44  ;;  %v4091_v4 = vand.u32 4294901760, %v3372_v62  ;;  %v4092_v44 = vand.u32 4294901760, %v3030_v3  ;;  %v3448_v42 = vsub.f32 %v237_v41, %v3423_v55 }
  0xe2   :  { %1311 = vmatpush.msra.mxu0 %v3286_v10  ;;  %1374 = vmatpush.msra.mxu1 %v1373_v53  ;;  %v3436_v53 = vand.u32 4294901760, %v236_v15  ;;  %v1402_v0 = vsub.f32 %v3388_v8, %v4093_v33  ;;  %v4094_v3 = vand.u32 4294901760, %v3046_v12  ;;  %v4096_v33 = vand.u32 4294901760, %v3063_v7 }
  0xe3   :  { %1211 = vmatpush.msrb.mxu2 %v4090_v20  ;;  %1278 = vmatpush.msrb.mxu3 %v3048_v25  ;;  %v1396_v60 = vsub.f32 %v3372_v62, %v4091_v4  ;;  %v1391_v25 = vand.u32 4294901760, %v1390_v63  ;;  %v1413_v20 = vand.u32 4294901760, %v3417_v13  ;;  %v1408_v4 = vsub.f32 %v3401_v43, %v1407_v58 }
  0xe4   :  { %1313 = vmatpush.msra.mxu0 %v3310_v54  ;;  %1380 = vmatpush.msra.mxu1 %v1379_v30  ;;  %v3450_v30 = vpop.f32.mrf.mxu0  ;;  %v3462_v41 = vsub.f32 %v236_v15, %v3436_v53  ;;  %v1403_v12 = vand.u32 4294901760, %v1402_v0  ;;  %v4097_v0 = vand.u32 4294901760, %v3079_v45 }
  0xe5   :  { %1149 = vmatmul.f32.vlgmr.msrb.gmra.mxu0 %v3247_v22  ;;  %1215 = vmatpush.msrb.mxu2 %v4092_v44  ;;  %v1397_v63 = vand.u32 4294901760, %v1396_v60  ;;  %v1419_v44 = vand.u32 4294901760, %v3433_v11  ;;  %v3468_v60 = vpop.f32.mrf.mxu1 }
  0xe6   :  { %1280 = vmatpush.msrb.mxu3 %v3072_v47  ;;  %1315 = vmatpush.msra.mxu0 %v3326_v37  ;;  %v4095_v47 = vand.u32 4294901760, %v3247_v22  ;;  %v1409_v22 = vand.u32 4294901760, %v1408_v4  ;;  %v1431_v7 = vand.u32 4294901760, %v3462_v41  ;;  %v4099_v4 = vand.u32 4294901760, %v3113_v5 }
  0xe7   :  { %1386 = vmatpush.msra.mxu1 %v1385_v49  ;;  %1219 = vmatpush.msrb.mxu2 %v4094_v3  ;;  %v1414_v49 = vsub.f32 %v3417_v13, %v1413_v20  ;;  %v1420_v15 = vsub.f32 %v3433_v11, %v1419_v44  ;;  %v4098_v3 = vand.u32 4294901760, %v3098_v36  ;;  %v4101_v5 = vand.u32 4294901760, %v3145_v16 }
  0xe8   :  { %1188 = vmatmul.f32.vlgmr.msrb.gmra.mxu1 %v4095_v47  ;;  %1282 = vmatpush.msrb.mxu3 %v3085_v18  ;;  %v1425_v18 = vand.u32 4294901760, %v3448_v42  ;;  %v1432_v36 = vsub.f32 %v3462_v41, %v1431_v7  ;;  %v4100_v47 = vand.u32 4294901760, %v3128_v2  ;;  %v4102_v2 = vand.u32 4294901760, %v3226_v34 }
  0xe9   :  { %1317 = vmatpush.msra.mxu0 %v3341_v28  ;;  %1392 = vmatpush.msra.mxu1 %v1391_v25  ;;  %v179_v25 = vunpack.c.h.bf16 %v3153_v27  ;;  %v1421_v45 = vand.u32 4294901760, %v1420_v15  ;;  %v4104_v16 = vand.u32 4294901760, %v3240_v56  ;;  %v4107_v15 = vand.u32 4294901760, %v3185_v35 }
  0xea   :  { %1223 = vmatpush.msrb.mxu2 %v4096_v33  ;;  %1284 = vmatpush.msrb.mxu3 %v3100_v14  ;;  %v1415_v14 = vand.u32 4294901760, %v1414_v49  ;;  %v1426_v27 = vsub.f32 %v3448_v42, %v1425_v18  ;;  %v4105_v33 = vand.u32 4294901760, %v3175_v59 }
  0xeb   :  { %1319 = vmatpush.msra.mxu0 %v3356_v17  ;;  %1398 = vmatpush.msra.mxu1 %v1397_v63 }
  0xec   :  { %1227 = vmatpush.msrb.mxu2 %v4097_v0  ;;  %1286 = vmatpush.msrb.mxu3 %v3115_v48  ;;  %v158_v63 = vpop.f32.mrf.mxu0  ;;  %v185_v48 = vmul.f32 %v179_v25, %v3358_v1  ;;  %v4108_v25 = vand.u32 4294901760, %v3272_v32 }
  0xed   :  { %1321 = vmatpush.msra.mxu0 %v3374_v26  ;;  %1404 = vmatpush.msra.mxu1 %v1403_v12  ;;  %v1427_v12 = vand.u32 4294901760, %v1426_v27  ;;  %v4115_v27 = vand.u32 4294901760, %v3354_v52 }
  0xee   :  { %1231 = vmatpush.msrb.mxu2 %v4098_v3  ;;  %1288 = vmatpush.msrb.mxu3 %v3130_v61  ;;  %v171_v61 = vpop.f32.mrf.mxu1  ;;  %v3503_v1 = vand.u32 4294901760, %v185_v48 }
  0xef   :  { %1323 = vmatpush.msra.mxu0 %v3390_v31  ;;  %1410 = vmatpush.msra.mxu1 %v1409_v22  ;;  %v4106_v22 = vand.u32 4294901760, %v3259_v19  ;;  %v262_v61 = vld [vmem:[%s3997_s3 + $0x250] sm:$0xff] }
  0xf0   :  { %1235 = vmatpush.msrb.mxu2 %v4099_v4  ;;  %1290 = vmatpush.msrb.mxu3 %v3147_v23  ;;  %v1433_v23 = vand.u32 4294901760, %v1432_v36  ;;  %v3516_v49 = vsub.f32 %v185_v48, %v3503_v1  ;;  %v4116_v48 = vand.u32 4294901760, %v3372_v62 }
  0xf1   :  { %1325 = vmatpush.msra.mxu0 %v3403_v40  ;;  %1416 = vmatpush.msra.mxu1 %v1415_v14 }
  0xf2   :  { %1239 = vmatpush.msrb.mxu2 %v4100_v47  ;;  %1292 = vmatpush.msrb.mxu3 %v3164_v51  ;;  %v4103_v51 = vand.u32 4294901760, %v3162_v38  ;;  %v1332_v38 = vand.u32 4294901760, %v3516_v49 }
  0xf3   :  { %1327 = vmatpush.msra.mxu0 %v3423_v55  ;;  %1422 = vmatpush.msra.mxu1 %v1421_v45 }
  0xf4   :  { %1294 = vmatmul.f32.vlgmr.msrb.gmra.mxu3 %v3218_v50  ;;  %1243 = vmatpush.msrb.mxu2 %v4101_v5  ;;  %v1333_v59 = vsub.f32 %v3516_v49, %v1332_v38  ;;  %v260_v5 = vld [vmem:[%s3997_s3 + $0x240] sm:$0xff] }
  0xf5   :  { %1495 = vmatpush.msra.mxu3 %v3203_v6  ;;  %1329 = vmatpush.msra.mxu0 %v3436_v53 }
  0xf6   :  { %1428 = vmatpush.msra.mxu1 %v1427_v12  ;;  %1247 = vmatpush.msrb.mxu2 %v4103_v51  ;;  %v3649_v51 = vand.u32 4294901760, %v260_v5 }
  0xf7   :  { %1536 = vmatpush.msrb.mxu0 %v4102_v2  ;;  %1497 = vmatpush.msra.mxu3 %v3212_v21 }
  0xf8   :  { %1434 = vmatpush.msra.mxu1 %v1433_v23  ;;  %1251 = vmatpush.msrb.mxu2 %v4105_v33 }
  0xf9   :  { %1540 = vmatpush.msrb.mxu0 %v4104_v16  ;;  %1499 = vmatpush.msra.mxu3 %v3235_v46  ;;  %v259_v16 = vld [vmem:[%s3997_s3 + $0x238] sm:$0xff] }
  0xfa   :  { %1603 = vmatpush.msrb.mxu1 %v3203_v6  ;;  %1255 = vmatpush.msrb.mxu2 %v4107_v15  ;;  %v4109_v6 = vld [vmem:[#allocation2_spill] sm:$0xff] }
  0xfb   :  { %1544 = vmatpush.msrb.mxu0 %v4106_v22  ;;  %1501 = vmatpush.msra.mxu3 %v3249_v24  ;;  %v4110_v35 = vand.u32 4294901760, %v4109_v6 }
  0xfc   :  { %1605 = vmatpush.msrb.mxu1 %v3212_v21  ;;  %1257 = vmatmul.f32.vlgmr.msrb.gmra.mxu2 %v3218_v50  ;;  %v267_v21 = vld [vmem:[%s3997_s3 + $0x278] sm:$0xff]  ;;  %v4111_v50 = vld [vmem:[#allocation3_spill] sm:$0xff] }
  0xfd   :  { %1548 = vmatpush.msrb.mxu0 %v4108_v25  ;;  %1503 = vmatpush.msra.mxu3 %v3261_v29  ;;  %v3559_v0 = vand.u32 4294901760, %v267_v21  ;;  %v3683_v25 = vsub.f32 %v260_v5, %v3649_v51 }
  0xfe   :  { %1442 = vmatpush.msra.mxu2 %v3226_v34  ;;  %1607 = vmatpush.msrb.mxu1 %v3235_v46  ;;  %v4112_v34 = vand.u32 4294901760, %v4111_v50  ;;  %v266_v46 = vld [vmem:[%s3997_s3 + $0x270] sm:$0xff] }
  0xff   :  { %1505 = vmatpush.msra.mxu3 %v3274_v57  ;;  %1552 = vmatpush.msrb.mxu0 %v4110_v35  ;;  %v3569_v14 = vand.u32 4294901760, %v266_v46 }
 0x100   :  { %1445 = vmatpush.msra.mxu2 %v3240_v56  ;;  %1609 = vmatpush.msrb.mxu1 %v3249_v24  ;;  %v4113_v24 = vand.u32 4294901760, %v3319_v39  ;;  %v1334_v56 = vand.u32 4294901760, %v1333_v59 }
 0x101   :  { %1507 = vmatpush.msra.mxu3 %v3286_v10  ;;  %1556 = vmatpush.msrb.mxu0 %v4112_v34  ;;  %v3591_v63 = vsub.f32 %v266_v46, %v3569_v14  ;;  %v255_v34 = vld [vmem:[%s3997_s3 + $0x218] sm:$0xff] }
 0x102   :  { %1448 = vmatpush.msra.mxu2 %v3259_v19  ;;  %1611 = vmatpush.msrb.mxu1 %v3261_v29  ;;  %v265_v19 = vld [vmem:[%s3997_s3 + $0x268] sm:$0xff]  ;;  %v4114_v29 = vand.u32 4294901760, %v3339_v9 }
 0x103   :  { %1509 = vmatpush.msra.mxu3 %v3310_v54  ;;  %1560 = vmatpush.msrb.mxu0 %v4113_v24  ;;  %v3580_v3 = vand.u32 4294901760, %v265_v19  ;;  %v1688_v47 = vand.u32 4294901760, %v3591_v63 }
 0x104   :  { %1451 = vmatpush.msra.mxu2 %v3272_v32  ;;  %1613 = vmatpush.msrb.mxu1 %v3274_v57  ;;  %v264_v32 = vld [vmem:[%s3997_s3 + $0x260] sm:$0xff]  ;;  %v3578_v57 = vsub.f32 %v267_v21, %v3559_v0 }
 0x105   :  { %1511 = vmatpush.msra.mxu3 %v3326_v37  ;;  %1564 = vmatpush.msrb.mxu0 %v4114_v29  ;;  %v3593_v45 = vand.u32 4294901760, %v264_v32 }
 0x106   :  { %1454 = vmatpush.msra.mxu2 %v4109_v6  ;;  %1615 = vmatpush.msrb.mxu1 %v3286_v10  ;;  %v263_v10 = vld [vmem:[%s3997_s3 + $0x258] sm:$0xff]  ;;  %v1682_v4 = vand.u32 4294901760, %v3578_v57 }
 0x107   :  { %1335 = vmatmul.f32.vlgmr.msra.gmra.mxu0 %v1334_v56  ;;  %1513 = vmatpush.msra.mxu3 %v3341_v28  ;;  %v3604_v36 = vand.u32 4294901760, %v263_v10  ;;  %v3619_v12 = vsub.f32 %v264_v32, %v3593_v45 }
 0x108   :  { %1457 = vmatpush.msra.mxu2 %v4111_v50  ;;  %1568 = vmatpush.msrb.mxu0 %v4115_v27  ;;  %v1724_v50 = vand.u32 4294901760, %v3683_v25  ;;  %v253_v27 = vld [vmem:[%s3997_s3 + $0x208] sm:$0xff] }
 0x109   :  { %1617 = vmatpush.msrb.mxu1 %v3310_v54  ;;  %1515 = vmatpush.msra.mxu3 %v3356_v17  ;;  %v3602_v54 = vsub.f32 %v265_v19, %v3580_v3 }
 0x10a   :  { %1436 = vmatmul.f32.vlgmr.msra.gmra.mxu1 %v3503_v1  ;;  %1460 = vmatpush.msra.mxu2 %v3319_v39  ;;  %v261_v39 = vld [vmem:[%s3997_s3 + $0x248] sm:$0xff]  ;;  %v1725_v32 = vsub.f32 %v3683_v25, %v1724_v50 }
 0x10b   :  { %1572 = vmatpush.msrb.mxu0 %v4116_v48  ;;  %1619 = vmatpush.msrb.mxu1 %v3326_v37  ;;  %v4117_v37 = vand.u32 4294901760, %v3388_v8  ;;  %v1694_v23 = vand.u32 4294901760, %v3602_v54  ;;  %v3638_v2 = vand.u32 4294901760, %v261_v39 }
 0x10c   :  { %1463 = vmatpush.msra.mxu2 %v3339_v9  ;;  %1517 = vmatpush.msra.mxu3 %v3374_v26  ;;  %v3623_v9 = vand.u32 4294901760, %v262_v61 }
 0x10d   :  { %1576 = vmatpush.msrb.mxu0 %v4117_v37  ;;  %1621 = vmatpush.msrb.mxu1 %v3341_v28  ;;  %v1683_v28 = vsub.f32 %v3578_v57, %v1682_v4  ;;  %v3667_v22 = vsub.f32 %v261_v39, %v3638_v2  ;;  %v252_v37 = vld [vmem:[%s3997_s3 + $0x200] sm:$0xff] }
 0x10e   :  { %1466 = vmatpush.msra.mxu2 %v3354_v52  ;;  %1519 = vmatpush.msra.mxu3 %v3390_v31  ;;  %v3636_v52 = vsub.f32 %v263_v10, %v3604_v36 }
 0x10f   :  { %1580 = vmatpush.msrb.mxu0 %v1407_v58  ;;  %1623 = vmatpush.msrb.mxu1 %v3356_v17  ;;  %v1689_v17 = vsub.f32 %v3591_v63, %v1688_v47  ;;  %v1700_v58 = vand.u32 4294901760, %v3619_v12  ;;  %v1718_v35 = vand.u32 4294901760, %v3667_v22 }
 0x110   :  { %1469 = vmatpush.msra.mxu2 %v3372_v62  ;;  %1521 = vmatpush.msra.mxu3 %v3403_v40  ;;  %v3657_v62 = vsub.f32 %v262_v61, %v3623_v9  ;;  %v1706_v33 = vand.u32 4294901760, %v3636_v52 }
 0x111   :  { %1584 = vmatpush.msrb.mxu0 %v1413_v20  ;;  %1625 = vmatpush.msrb.mxu1 %v3374_v26  ;;  %v1684_v26 = vand.u32 4294901760, %v1683_v28  ;;  %v1695_v20 = vsub.f32 %v3602_v54, %v1694_v23  ;;  %v1701_v15 = vsub.f32 %v3619_v12, %v1700_v58  ;;  %v1719_v19 = vsub.f32 %v3667_v22, %v1718_v35 }
 0x112   :  { %1472 = vmatpush.msra.mxu2 %v3388_v8  ;;  %1523 = vmatpush.msra.mxu3 %v3423_v55  ;;  %v258_v8 = vld [vmem:[%s3997_s3 + $0x230] sm:$0xff]  ;;  %v1707_v6 = vsub.f32 %v3636_v52, %v1706_v33 }
 0x113   :  { %1588 = vmatpush.msrb.mxu0 %v1419_v44  ;;  %1627 = vmatpush.msrb.mxu1 %v3390_v31  ;;  %v3674_v44 = vand.u32 4294901760, %v259_v16  ;;  %v1690_v31 = vand.u32 4294901760, %v1689_v17  ;;  %v1696_v59 = vand.u32 4294901760, %v1695_v20  ;;  %v1720_v39 = vand.u32 4294901760, %v1719_v19 }
 0x114   :  { %1475 = vmatpush.msra.mxu2 %v3401_v43  ;;  %1525 = vmatpush.msra.mxu3 %v3436_v53  ;;  %v257_v43 = vld [vmem:[%s3997_s3 + $0x228] sm:$0xff]  ;;  %v1708_v56 = vand.u32 4294901760, %v1707_v6 }
 0x115   :  { %1592 = vmatpush.msrb.mxu0 %v1425_v18  ;;  %1629 = vmatpush.msrb.mxu1 %v3403_v40  ;;  %v1712_v18 = vand.u32 4294901760, %v3657_v62  ;;  %v3692_v40 = vand.u32 4294901760, %v258_v8  ;;  %v3708_v21 = vand.u32 4294901760, %v257_v43 }
 0x116   :  { %1529 = vmatmul.f32.vlgmr.msra.gmra.mxu3 %v1332_v38  ;;  %1478 = vmatpush.msra.mxu2 %v3417_v13  ;;  %v256_v38 = vld [vmem:[%s3997_s3 + $0x220] sm:$0xff]  ;;  %v3706_v13 = vsub.f32 %v259_v16, %v3674_v44  ;;  %v1726_v16 = vand.u32 4294901760, %v1725_v32 }
 0x117   :  { %1685 = vmatpush.msrb.mxu3 %v1684_v26  ;;  %1596 = vmatpush.msrb.mxu0 %v1431_v7  ;;  %v1702_v7 = vand.u32 4294901760, %v1701_v15  ;;  %v3721_v46 = vsub.f32 %v258_v8, %v3692_v40  ;;  %v3723_v24 = vand.u32 4294901760, %v256_v38  ;;  %v3736_v29 = vsub.f32 %v257_v43, %v3708_v21 }
 0x118   :  { %1631 = vmatpush.msrb.mxu1 %v3423_v55  ;;  %1598 = vmatmul.f32.vlgmr.msrb.gmra.mxu0 %v3503_v1  ;;  %v1713_v55 = vsub.f32 %v3657_v62, %v1712_v18  ;;  %v3780_v8 = vand.u32 4294901760, %v252_v37 }
 0x119   :  { %1691 = vmatpush.msrb.mxu3 %v1690_v31  ;;  %1783 = vmatpush.msra.mxu0 %v3578_v57  ;;  %v4053_v48 = vand.u32 4294901760, %v3721_v46  ;;  %v3751_v61 = vsub.f32 %v256_v38, %v3723_v24  ;;  %v4052_v28 = vand.u32 4294901760, %v3736_v29  ;;  %v175_v31 = vld [vmem:[%s3998_s1 + $0x10] sm:$0xff]  ;;  %v4118_v57 = vand.u32 4294901760, %v3706_v13 }
 0x11a   :  { %1481 = vmatpush.msra.mxu2 %v3433_v11  ;;  %1633 = vmatpush.msrb.mxu1 %v3436_v53  ;;  %v254_v11 = vld [vmem:[%s3997_s3 + $0x210] sm:$0xff]  ;;  %v4054_v53 = vand.u32 4294901760, %v3706_v13  ;;  %v1714_v10 = vand.u32 4294901760, %v1713_v55  ;;  %v3803_v55 = vsub.f32 %v252_v37, %v3780_v8  ;;  %v181_v19 = vunpack.c.h.bf16 %v175_v31 }
 0x11b   :  { %1635 = vmatmul.f32.vlgmr.msrb.gmra.mxu1 %v3503_v1  ;;  %1697 = vmatpush.msrb.mxu3 %v1696_v59  ;;  %v3738_v1 = vand.u32 4294901760, %v255_v34  ;;  %v4051_v26 = vand.u32 4294901760, %v3751_v61  ;;  %v1743_v43 = vsub.f32 %v3736_v29, %v4052_v28 }
 0x11c   :  { %1786 = vmatpush.msra.mxu0 %v3591_v63  ;;  %1836 = vmatpush.msra.mxu1 %v3559_v0  ;;  %v1731_v5 = vsub.f32 %v3706_v13, %v4054_v53  ;;  %v4119_v63 = vand.u32 4294901760, %v3721_v46 }
 0x11d   :  { %1484 = vmatpush.msra.mxu2 %v3448_v42  ;;  %1703 = vmatpush.msrb.mxu3 %v1702_v7  ;;  %v3753_v42 = vand.u32 4294901760, %v254_v11  ;;  %v3766_v17 = vsub.f32 %v255_v34, %v3738_v1  ;;  %v1749_v7 = vsub.f32 %v3751_v61, %v4051_v26 }
 0x11e   :  { %1789 = vmatpush.msra.mxu0 %v3602_v54  ;;  %1838 = vmatpush.msra.mxu1 %v3569_v14  ;;  %v1732_v15 = vand.u32 4294901760, %v1731_v5  ;;  %v4047_v5 = vand.u32 4294901760, %v3803_v55  ;;  %v4121_v54 = vand.u32 4294901760, %v3751_v61 }
 0x11f   :  { %1487 = vmatpush.msra.mxu2 %v3462_v41  ;;  %1709 = vmatpush.msrb.mxu3 %v1708_v56  ;;  %v3768_v41 = vand.u32 4294901760, %v253_v27  ;;  %v3778_v20 = vsub.f32 %v254_v11, %v3753_v42  ;;  %v4050_v59 = vand.u32 4294901760, %v3766_v17  ;;  %v180_v56 = vunpack.c.l.bf16 %v175_v31 }
 0x120   :  { %1490 = vmatmul.f32.vlgmr.msra.gmra.mxu2 %v3516_v49  ;;  %1792 = vmatpush.msra.mxu0 %v3619_v12  ;;  %v1737_v49 = vsub.f32 %v3721_v46, %v4053_v48  ;;  %v1744_v11 = vand.u32 4294901760, %v1743_v43 }
 0x121   :  { %1640 = vmatpush.msrb.mxu2 %v3559_v0  ;;  %1840 = vmatpush.msra.mxu1 %v3580_v3  ;;  %v3793_v6 = vsub.f32 %v253_v27, %v3768_v41  ;;  %v4049_v34 = vand.u32 4294901760, %v3778_v20  ;;  %v1755_v32 = vsub.f32 %v3766_v17, %v4050_v59 }
 0x122   :  { %1715 = vmatpush.msrb.mxu3 %v1714_v10  ;;  %1795 = vmatpush.msra.mxu0 %v3636_v52  ;;  %v1738_v38 = vand.u32 4294901760, %v1737_v49  ;;  %v271_v10 = vld [vmem:[%s3997_s3 + $0x298] sm:$0xff]  ;;  %v186_v49 = vmul.f32 %v180_v56, %v3450_v30  ;;  %v269_v30 = vld [vmem:[%s3997_s3 + $0x288] sm:$0xff]  ;;  %v1773_v56 = vsub.f32 %v3803_v55, %v4047_v5  ;;  %v414_v52 = vpop.f32.mrf.mxu3 }
 0x123   :  { %1642 = vmatpush.msrb.mxu2 %v3569_v14  ;;  %1842 = vmatpush.msra.mxu1 %v3593_v45  ;;  %v4048_v27 = vand.u32 4294901760, %v3793_v6  ;;  %v1761_v37 = vsub.f32 %v3778_v20, %v4049_v34  ;;  %v3828_v31 = vand.u32 4294901760, %v271_v10  ;;  %v1756_v43 = vand.u32 4294901760, %v1755_v32 }
 0x124   :  { %1721 = vmatpush.msrb.mxu3 %v1720_v39  ;;  %1798 = vmatpush.msra.mxu0 %v3657_v62  ;;  %v1750_v39 = vand.u32 4294901760, %v1749_v7  ;;  %v4124_v12 = vand.u32 4294901760, %v3793_v6  ;;  %v507_v62 = vpop.f32.mrf.mxu1 }
 0x125   :  { %1644 = vmatpush.msrb.mxu2 %v3580_v3  ;;  %1844 = vmatpush.msra.mxu1 %v3604_v36  ;;  %v3854_v32 = vsub.f32 %v271_v10, %v3828_v31  ;;  %v1774_v10 = vand.u32 4294901760, %v1773_v56 }
 0x126   :  { %1727 = vmatpush.msrb.mxu3 %v1726_v16  ;;  %1801 = vmatpush.msra.mxu0 %v3667_v22  ;;  %v270_v16 = vld [vmem:[%s3997_s3 + $0x290] sm:$0xff] }
 0x127   :  { %1646 = vmatpush.msrb.mxu2 %v3593_v45  ;;  %1846 = vmatpush.msra.mxu1 %v3623_v9  ;;  %v3840_v7 = vand.u32 4294901760, %v270_v16 }
 0x128   :  { %1733 = vmatpush.msrb.mxu3 %v1732_v15  ;;  %1804 = vmatpush.msra.mxu0 %v3683_v25  ;;  %v187_v15 = vmul.f32 %v181_v19, %v3468_v60  ;;  %v1762_v60 = vand.u32 4294901760, %v1761_v37  ;;  %v268_v19 = vld [vmem:[%s3997_s3 + $0x280] sm:$0xff] }
 0x129   :  { %1648 = vmatpush.msrb.mxu2 %v3604_v36  ;;  %1848 = vmatpush.msra.mxu1 %v3638_v2  ;;  %v3865_v34 = vand.u32 4294901760, %v268_v19 }
 0x12a   :  { %1739 = vmatpush.msrb.mxu3 %v1738_v38  ;;  %1807 = vmatpush.msra.mxu0 %v3706_v13  ;;  %v1767_v38 = vsub.f32 %v3793_v6, %v4048_v27  ;;  %v273_v37 = vsel %vm91_vm0, %v187_v15, 0  ;;  %v3863_v27 = vsub.f32 %v270_v16, %v3840_v7  ;;  %v613_v25 = vpop.f32.mrf.mxu3 }
 0x12b   :  { %1650 = vmatpush.msrb.mxu2 %v3623_v9  ;;  %1850 = vmatpush.msra.mxu1 %v3649_v51  ;;  %v3869_v15 = vand.u32 4294901760, %v273_v37 }
 0x12c   :  { %1745 = vmatpush.msrb.mxu3 %v1744_v11  ;;  %1810 = vmatpush.msra.mxu0 %v3721_v46  ;;  %v3849_v11 = vand.u32 4294901760, %v186_v49  ;;  %v1768_v5 = vand.u32 4294901760, %v1767_v38  ;;  %v2029_v16 = vand.u32 4294901760, %v3863_v27  ;;  %v755_v13 = vpop.f32.mrf.mxu1 }
 0x12d   :  { %1652 = vmatpush.msrb.mxu2 %v3638_v2  ;;  %1852 = vmatpush.msra.mxu1 %v3674_v44  ;;  %v3886_v56 = vsub.f32 %v273_v37, %v3869_v15 }
 0x12e   :  { %1751 = vmatpush.msrb.mxu3 %v1750_v39  ;;  %1813 = vmatpush.msra.mxu0 %v3736_v29  ;;  %v3856_v39 = vand.u32 4294901760, %v269_v30  ;;  %v1672_v59 = vsub.f32 %v186_v49, %v3849_v11  ;;  %v3882_v49 = vsub.f32 %v268_v19, %v3865_v34  ;;  %v2030_v19 = vsub.f32 %v3863_v27, %v2029_v16 }
 0x12f   :  { %1654 = vmatpush.msrb.mxu2 %v3649_v51  ;;  %1854 = vmatpush.msra.mxu1 %v3692_v40  ;;  %v2002_v26 = vand.u32 4294901760, %v3886_v56 }
 0x130   :  { %1757 = vmatpush.msrb.mxu3 %v1756_v43  ;;  %1816 = vmatpush.msra.mxu0 %v3751_v61  ;;  %v2023_v43 = vand.u32 4294901760, %v3854_v32  ;;  %v3875_v38 = vsub.f32 %v269_v30, %v3856_v39  ;;  %v2041_v37 = vand.u32 4294901760, %v3882_v49  ;;  %v2031_v48 = vand.u32 4294901760, %v2030_v19 }
 0x131   :  { %1656 = vmatpush.msrb.mxu2 %v3674_v44  ;;  %1856 = vmatpush.msra.mxu1 %v3708_v21  ;;  %v2003_v53 = vsub.f32 %v3886_v56, %v2002_v26 }
 0x132   :  { %1763 = vmatpush.msrb.mxu3 %v1762_v60  ;;  %1819 = vmatpush.msra.mxu0 %v3766_v17  ;;  %v1673_v60 = vand.u32 4294901760, %v1672_v59  ;;  %v2035_v30 = vand.u32 4294901760, %v3875_v38 }
 0x133   :  { %1658 = vmatpush.msrb.mxu2 %v3692_v40  ;;  %1858 = vmatpush.msra.mxu1 %v3723_v24 }
 0x134   :  { %1769 = vmatpush.msrb.mxu3 %v1768_v5  ;;  %1822 = vmatpush.msra.mxu0 %v3778_v20  ;;  %v2024_v5 = vsub.f32 %v3854_v32, %v2023_v43 }
 0x135   :  { %1660 = vmatpush.msrb.mxu2 %v3708_v21  ;;  %1860 = vmatpush.msra.mxu1 %v3738_v1 }
 0x136   :  { %1775 = vmatpush.msrb.mxu3 %v1774_v10  ;;  %1825 = vmatpush.msra.mxu0 %v3793_v6  ;;  %v1674_v10 = vsub.f32 %v1672_v59, %v1673_v60  ;;  %v2025_v28 = vand.u32 4294901760, %v2024_v5 }
 0x137   :  { %1662 = vmatpush.msrb.mxu2 %v3723_v24  ;;  %1862 = vmatpush.msra.mxu1 %v3753_v42 }
 0x138   :  { %1777 = vmatmul.f32.vlgmr.msrb.gmra.mxu3 %v3849_v11  ;;  %1828 = vmatpush.msra.mxu0 %v3803_v55 }
 0x139   :  { %1944 = vmatpush.msra.mxu3 %v3559_v0  ;;  %1664 = vmatpush.msrb.mxu2 %v3738_v1  ;;  %v2036_v0 = vsub.f32 %v3875_v38, %v2035_v30 }
 0x13a   :  { %1864 = vmatpush.msra.mxu1 %v3768_v41  ;;  %1831 = vmatmul.f32.vlgmr.msra.gmra.mxu0 %v1672_v59  ;;  %v2042_v59 = vsub.f32 %v3882_v49, %v2041_v37 }
 0x13b   :  { %1946 = vmatpush.msra.mxu3 %v3569_v14  ;;  %1666 = vmatpush.msrb.mxu2 %v3753_v42  ;;  %v1675_v14 = vand.u32 4294901760, %v1674_v10  ;;  %v2037_v5 = vand.u32 4294901760, %v2036_v0 }
 0x13c   :  { %1866 = vmatpush.msra.mxu1 %v3780_v8  ;;  %1993 = vmatpush.msrb.mxu0 %v3828_v31 }
 0x13d   :  { %1870 = vmatmul.f32.vlgmr.msra.gmra.mxu1 %v1673_v60  ;;  %1948 = vmatpush.msra.mxu3 %v3580_v3  ;;  %v2043_v3 = vand.u32 4294901760, %v2042_v59 }
 0x13e   :  { %1668 = vmatpush.msrb.mxu2 %v3768_v41  ;;  %1995 = vmatpush.msrb.mxu0 %v3840_v7 }
 0x13f   :  { %2026 = vmatpush.msrb.mxu1 %v2025_v28  ;;  %1950 = vmatpush.msra.mxu3 %v3593_v45  ;;  %v2004_v45 = vand.u32 4294901760, %v2003_v53 }
 0x140   :  { %1670 = vmatpush.msrb.mxu2 %v3780_v8  ;;  %1997 = vmatpush.msrb.mxu0 %v3856_v39 }
 0x141   :  { %2032 = vmatpush.msrb.mxu1 %v2031_v48  ;;  %1676 = vmatmul.f32.vlgmr.msrb.gmra.mxu2 %v1675_v14 }
 0x142   :  { %1877 = vmatpush.msra.mxu2 %v1682_v4  ;;  %1952 = vmatpush.msra.mxu3 %v3604_v36  ;;  %v4120_v4 = vand.u32 4294901760, %v3736_v29  ;;  %v4122_v36 = vand.u32 4294901760, %v3766_v17 }
 0x143   :  { %1999 = vmatpush.msrb.mxu0 %v3865_v34  ;;  %2038 = vmatpush.msrb.mxu1 %v2037_v5  ;;  %v954_v48 = vpop.f32.mrf.mxu1 }
 0x144   :  { %1881 = vmatpush.msra.mxu2 %v1688_v47  ;;  %1954 = vmatpush.msra.mxu3 %v3623_v9  ;;  %v4123_v47 = vand.u32 4294901760, %v3778_v20  ;;  %v4125_v9 = vand.u32 4294901760, %v3803_v55 }
 0x145   :  { %2005 = vmatmul.f32.vlgmr.msrb.gmra.mxu0 %v2004_v45  ;;  %2044 = vmatpush.msrb.mxu1 %v2043_v3 }
 0x146   :  { %2064 = vmatpush.msra.mxu0 %v3854_v32  ;;  %1885 = vmatpush.msra.mxu2 %v1694_v23  ;;  %v313_v23 = vpop.f32.mrf.mxu2 }
 0x147   :  { %1956 = vmatpush.msra.mxu3 %v3638_v2  ;;  %2046 = vmatmul.f32.vlgmr.msrb.gmra.mxu1 %v3869_v15  ;;  %v415_v2 = vadd.f32 %v414_v52, %v313_v23 }
 0x148   :  { %2067 = vmatpush.msra.mxu0 %v3863_v27  ;;  %2093 = vmatpush.msra.mxu1 %v3828_v31 }
 0x149   :  { %1889 = vmatpush.msra.mxu2 %v1700_v58  ;;  %1958 = vmatpush.msra.mxu3 %v3649_v51  ;;  %v468_v58 = vpop.f32.mrf.mxu0 }
 0x14a   :  { %2070 = vmatpush.msra.mxu0 %v3875_v38  ;;  %2095 = vmatpush.msra.mxu1 %v3840_v7  ;;  %v469_v51 = vadd.f32 %v468_v58, %v415_v2 }
 0x14b   :  { %1893 = vmatpush.msra.mxu2 %v1706_v33  ;;  %1960 = vmatpush.msra.mxu3 %v3674_v44 }
 0x14c   :  { %2073 = vmatpush.msra.mxu0 %v3882_v49  ;;  %2097 = vmatpush.msra.mxu1 %v3856_v39  ;;  %v508_v22 = vadd.f32 %v507_v62, %v469_v51 }
 0x14d   :  { %1897 = vmatpush.msra.mxu2 %v1712_v18  ;;  %1962 = vmatpush.msra.mxu3 %v3692_v40 }
 0x14e   :  { %2076 = vmatmul.f32.vlgmr.msra.gmra.mxu0 %v3886_v56  ;;  %2099 = vmatpush.msra.mxu1 %v3865_v34  ;;  %v576_v33 = vpop.f32.mrf.mxu2 }
 0x14f   :  { %2122 = vmatpush.msrb.mxu0 %v2023_v43  ;;  %1901 = vmatpush.msra.mxu2 %v1718_v35  ;;  %v577_v44 = vadd.f32 %v576_v33, %v508_v22 }
 0x150   :  { %1964 = vmatpush.msra.mxu3 %v3708_v21  ;;  %2103 = vmatmul.f32.vlgmr.msra.gmra.mxu1 %v2002_v26 }
 0x151   :  { %2126 = vmatpush.msrb.mxu0 %v2029_v16  ;;  %2153 = vmatpush.msrb.mxu1 %v3828_v31  ;;  %v614_v18 = vadd.f32 %v613_v25, %v577_v44  ;;  %v654_v40 = vpop.f32.mrf.mxu0 }
 0x152   :  { %1905 = vmatpush.msra.mxu2 %v1724_v50  ;;  %1966 = vmatpush.msra.mxu3 %v3723_v24  ;;  %v848_v24 = vpop.f32.mrf.mxu3 }
 0x153   :  { %2130 = vmatpush.msrb.mxu0 %v2035_v30  ;;  %2155 = vmatpush.msrb.mxu1 %v3840_v7  ;;  %v655_v35 = vadd.f32 %v654_v40, %v614_v18 }
 0x154   :  { %1909 = vmatpush.msra.mxu2 %v4118_v57  ;;  %1968 = vmatpush.msra.mxu3 %v3738_v1 }
 0x155   :  { %2134 = vmatpush.msrb.mxu0 %v2041_v37  ;;  %2157 = vmatpush.msrb.mxu1 %v3856_v39  ;;  %v756_v50 = vadd.f32 %v755_v13, %v655_v35 }
 0x156   :  { %1913 = vmatpush.msra.mxu2 %v4119_v63  ;;  %1970 = vmatpush.msra.mxu3 %v3753_v42  ;;  %v809_v21 = vpop.f32.mrf.mxu2 }
 0x157   :  { %2136 = vmatmul.f32.vlgmr.msrb.gmra.mxu0 %v3869_v15  ;;  %2159 = vmatpush.msrb.mxu1 %v3865_v34  ;;  %v810_v46 = vadd.f32 %v809_v21, %v756_v50 }
 0x158   :  { %1917 = vmatpush.msra.mxu2 %v4120_v4  ;;  %1972 = vmatpush.msra.mxu3 %v3768_v41 }
 0x159   :  { %2161 = vmatmul.f32.vlgmr.msrb.gmra.mxu1 %v3869_v15  ;;  %v849_v53 = vadd.f32 %v848_v24, %v810_v46  ;;  %v917_v29 = vpop.f32.mrf.mxu0 }
 0x15a   :  { %1921 = vmatpush.msra.mxu2 %v4121_v54  ;;  %1974 = vmatpush.msra.mxu3 %v3780_v8 }
 0x15b   :  { %1976 = vmatmul.f32.vlgmr.msra.gmra.mxu3 %v3849_v11  ;;  %v918_v1 = vadd.f32 %v917_v29, %v849_v53  ;;  %v2187_v53 = vlaneseq }
 0x15c   :  { %1925 = vmatpush.msra.mxu2 %v4122_v36 }
 0x15d   :  { %v955_v42 = vadd.f32 %v954_v48, %v918_v1 }
 0x15e   :  { %1929 = vmatpush.msra.mxu2 %v4123_v47  ;;  %v995_v61 = vpop.f32.mrf.mxu2 }
 0x15f   :  { %v996_v28 = vadd.f32 %v995_v61, %v955_v42  ;;  %v1096_v17 = vpop.f32.mrf.mxu3  ;;  %v2188_v61 = vand.u32 127, %v2187_v53 }
 0x160   :  { %1933 = vmatpush.msra.mxu2 %v4124_v12 }
 0x161   :  { %v1097_v41 = vadd.f32 %v1096_v17, %v996_v28  ;;  %vm2189_vm5 = vcmp.eq.s32.totalorder %v2188_v61, 0  ;;  %v2277_v28 = vmov 0.05  }
 0x162   :  { %1937 = vmatpush.msra.mxu2 %v4125_v9  ;;  %v1150_v26 = vpop.f32.mrf.mxu0  ;;  %v2190_v17 = vsel %vm2189_vm5, 1.0, %v2277_v28 }
 0x163   :  { %1939 = vmatmul.f32.vlgmr.msra.gmra.mxu2 %v3849_v11  ;;  %v1151_v20 = vadd.f32 %v1150_v26, %v1097_v41 }
 0x165   :  { %v1189_v8 = vpop.f32.mrf.mxu1 }
 0x166   :  { %v1190_v34 = vadd.f32 %v1189_v8, %v1151_v20 }
 0x177   :  { %v1295_v27 = vpop.f32.mrf.mxu3 }
 0x17f   :  { %v1258_v6 = vpop.f32.mrf.mxu2 }
 0x180   :  { %v1259_v55 = vadd.f32 %v1258_v6, %v1190_v34 }
 0x182   :  { %v1296_v31 = vadd.f32 %v1295_v27, %v1259_v55 }
 0x184   :  { %v1336_v7 = vpop.f32.mrf.mxu0 }
 0x185   :  { %v1337_v11 = vadd.f32 %v1336_v7, %v1296_v31 }
 0x187   :  { %v1437_v32 = vpop.f32.mrf.mxu1 }
 0x188   :  { %v1438_v15 = vadd.f32 %v1437_v32, %v1337_v11 }
 0x195   :  { %v1599_v38 = vpop.f32.mrf.mxu0 }
 0x198   :  { %v1636_v16 = vpop.f32.mrf.mxu1 }
 0x199   :  { %v1530_v49 = vpop.f32.mrf.mxu3 }
 0x1a3   :  { %v1491_v39 = vpop.f32.mrf.mxu2 }
 0x1a4   :  { %v1492_v43 = vadd.f32 %v1491_v39, %v1438_v15 }
 0x1a6   :  { %v1531_v60 = vadd.f32 %v1530_v49, %v1492_v43 }
 0x1a8   :  { %v1600_v56 = vadd.f32 %v1599_v38, %v1531_v60 }
 0x1aa   :  { %v1637_v10 = vadd.f32 %v1636_v16, %v1600_v56 }
 0x1b7   :  { %v1832_v30 = vpop.f32.mrf.mxu0 }
 0x1ba   :  { %v1871_v19 = vpop.f32.mrf.mxu1 }
 0x1bb   :  { %v1778_v59 = vpop.f32.mrf.mxu3 }
 0x1c2   :  { %v2006_v5 = vpop.f32.mrf.mxu0 }
 0x1c4   :  { %v1677_v37 = vpop.f32.mrf.mxu2  ;;  %v2047_v3 = vpop.f32.mrf.mxu1 }
 0x1c5   :  { %v1678_v0 = vadd.f32 %v1677_v37, %v1637_v10 }
 0x1c7   :  { %v1779_v14 = vadd.f32 %v1778_v59, %v1678_v0 }
 0x1c9   :  { %v1833_v45 = vadd.f32 %v1832_v30, %v1779_v14 }
 0x1cb   :  { %v1872_v57 = vadd.f32 %v1871_v19, %v1833_v45  ;;  %v2077_v54 = vpop.f32.mrf.mxu0 }
 0x1cd   :  { %v2104_v12 = vpop.f32.mrf.mxu1 }
 0x1d4   :  { %v2137_v58 = vpop.f32.mrf.mxu0 }
 0x1d6   :  { %v2162_v62 = vpop.f32.mrf.mxu1 }
 0x1de   :  { %v1977_v36 = vpop.f32.mrf.mxu3 }
 0x1e6   :  { %v1940_v63 = vpop.f32.mrf.mxu2 }
 0x1e7   :  { %v1941_v4 = vadd.f32 %v1940_v63, %v1872_v57 }
 0x1e9   :  { %v1978_v47 = vadd.f32 %v1977_v36, %v1941_v4 }
 0x1eb   :  { %v2007_v9 = vadd.f32 %v2006_v5, %v1978_v47 }
 0x1ed   :  { %v2048_v23 = vadd.f32 %v2047_v3, %v2007_v9 }
 0x1ef   :  { %v2078_v52 = vadd.f32 %v2077_v54, %v2048_v23 }
 0x1f1   :  { %v2105_v2 = vadd.f32 %v2104_v12, %v2078_v52 }
 0x1f3   :  { %v2138_v51 = vadd.f32 %v2137_v58, %v2105_v2 }
 0x1f5   :  { %v2163_v33 = vadd.f32 %v2162_v62, %v2138_v51 }
 0x1f7   :  { %v2257_v22 = vmul.f32 -1.442695, %v2163_v33 }
 0x1f9   :  { %2271 = vpow2.f32 %v2257_v22 }
 0x1ff   :  { %v2272_v44 = vpop.eup %2271 }
 0x200   :  { %v2168_v25 = vadd.f32 1.0, %v2272_v44 }
 0x202   :  { %2273 = vrcp.f32 %v2168_v25  ;;  %v2180_v13 = vand.u32 2147483648, %v2168_v25  ;;  %v2178_v50 = vand.u32 2147483647, %v2168_v25  ;;  %vm2174_vm2 = vweird.f32 %v2168_v25 }
 0x204   :  { %v2181_v24 = vor.u32 1.1754944e-38, %v2180_v13  ;;  %vm2179_vm4 = vcmp.eq.f32.partialorder %v2178_v50, 8.507059e+37 }
 0x208   :  { %v2274_v18 = vpop.eup %2273 }
 0x209   :  { %v2170_v40 = vmul.f32 %v2274_v18, %v2168_v25  ;;  %vm2175_vm1 = vweird.f32 %v2274_v18 }
 0x20a   :  { %vm2176_vm3 = vmor %vm2174_vm2, %vm2175_vm1 }
 0x20b   :  { %v2171_v35 = vsub.f32 1.0, %v2170_v40 }
 0x20d   :  { %v2172_v21 = vmul.f32 %v2274_v18, %v2171_v35 }
 0x20f   :  { %v2173_v46 = vadd.f32 %v2274_v18, %v2172_v21 }
 0x211   :  { %v2177_v29 = vsel %vm2176_vm3, %v2274_v18, %v2173_v46 }
 0x212   :  { %v2182_v1 = vsel %vm2179_vm4, %v2181_v24, %v2177_v29 }
 0x213   :  { %v2184_v48 = vadd.f32 1e-05, %v2182_v1 }
 0x215   :  { %2275 = vlog2.f32 %v2184_v48 }
 0x21b   :  { %v2276_v42 = vpop.eup %2275 }
 0x21c   :  { %v2186_v41 = vmul.f32 0.6931472, %v2276_v42 }
 0x21e   :  { %v2191_v26 = vmul.f32 %v2190_v17, %v2186_v41 }
 0x220   :  { %v2193_v20 = vsel %vm2192_vm6, %v2191_v26, 0.0 }
 0x221   :  { %2194 = vadd.xlane.f32.xlu0 %v2193_v20 }
 0x294   :  { %v2195_v8 = vpop.xlane.xlu0 %2194 }
 0x295   :  { %v2196_v6 = vsub.f32 0.0, %v2195_v8 }
 0x297   :  { %2198 = vst.msk [vmem:[%s3999_s4] sm:$0xff] %vm2197_vm7, %v2196_v6 }

</bundles_post_ra>
